<compile_context>
chip_gen: v7x
topology: tpu7x:2x2x1
jax: 0.10.0
libtpu: 0.0.40
codegen_flags: <defaults>
</compile_context>

<pallas_src>
import jax
import jax.numpy as jnp
from jax import lax
from jax.experimental import pallas as pl
from jax.experimental.pallas import tpu as pltpu


def _round_up(x, m):
    return ((x + m - 1) // m) * m


def _device_kind():
    try:
        return jax.devices()[0].device_kind.lower()
    except Exception:
        return ""


def _vmem_physical_bytes(kind):
    try:
        cap = getattr(pltpu.get_tpu_info(), "vmem_capacity_bytes", None)
        if cap:
            return int(cap)
    except Exception:
        pass
    return (64 << 20) if "v7" in kind else (128 << 20)


def _invariant_spec(shape):
    """Grid-invariant block: single-buffered if supported (halves weight VMEM)."""
    idx = lambda b, _n=len(shape): (0,) * _n
    try:
        return pl.BlockSpec(shape, idx, pipeline_mode=pl.Buffered(1))
    except Exception:
        return pl.BlockSpec(shape, idx)


def _make_birnn_kernel(split_recurrence, unroll):
    def kernel(x_ref,      # (T, TB, E_pad)      embedded tokens (time-major, mm_dtype)
               wih_ref,    # (E_pad, 2*H_pad)    [W_ih_fwd | W_ih_bwd] pre-transposed (mm_dtype)
               b_in_ref,   # (1, 2*H_pad)        [b_fwd | b_bwd]  (b_ih + b_hh folded, f32)
               whh_ref,    # fused: (2H_pad, 2H_pad) block-diag; split: (2, H_pad, H_pad)  (f32)
               wfc_ref,    # (2*H_pad, O_pad)    concat fc weight (mm_dtype)
               bfc_ref,    # (1, O_pad)          f32
               out_ref,    # (T, TB, O_pad)      f32
               pre_ref):   # scratch (T*TB, 2*H_pad) f32 : pre-activations, then hidden states
        T, TB, E = x_ref.shape
        H2 = pre_ref.shape[1]
        H = H2 // 2
        mm_dtype = wfc_ref.dtype

        # (1) Hoisted input projection: both directions in ONE (T*TB, E) x (E, 2H)
        #     MXU matmul (mm_dtype operands, f32 accumulation); bias added once.
        x2d = x_ref[...].reshape(T * TB, E)
        pre_ref[...] = (jnp.dot(x2d, wih_ref[...], preferred_element_type=jnp.float32)
                        + b_in_ref[...])

        # (2) Fused bidirectional recurrence with in-place hidden writeback.
        #     The fwd half consumes time s, the bwd half time T-1-s; each pre
        #     slice is read exactly once, then overwritten by the new hidden.
        if split_recurrence:
            # v5e: two (TB,H)x(H,H) matmuls — no zero blocks, no per-step concat.
            whh_f = whh_ref[0]
            whh_b = whh_ref[1]

            def step(s, carry):
                h_f, h_b = carry
                rf = pl.multiple_of(s * TB, 8)
                rb = pl.multiple_of((T - 1 - s) * TB, 8)
                h_f = jnp.tanh(pre_ref[pl.ds(rf, TB), :H]
                               + jnp.dot(h_f, whh_f, preferred_element_type=jnp.float32))
                h_b = jnp.tanh(pre_ref[pl.ds(rb, TB), H:]
                               + jnp.dot(h_b, whh_b, preferred_element_type=jnp.float32))
                pre_ref[pl.ds(rf, TB), :H] = h_f
                pre_ref[pl.ds(rb, TB), H:] = h_b
                return h_f, h_b

            h0 = (jnp.zeros((TB, H), jnp.float32), jnp.zeros((TB, H), jnp.float32))
            lax.fori_loop(0, T, step, h0, unroll=unroll)
        else:
            # v6e/v7x: one wide (TB,2H)x(2H,2H) block-diagonal MXU pass per step;
            # only one concat per step (to form the next carry).
            whh = whh_ref[...]

            def step(s, h):
                rf = pl.multiple_of(s * TB, 8)
                rb = pl.multiple_of((T - 1 - s) * TB, 8)
                hm = jnp.dot(h, whh, preferred_element_type=jnp.float32)
                h_f = jnp.tanh(pre_ref[pl.ds(rf, TB), :H] + hm[:, :H])
                h_b = jnp.tanh(pre_ref[pl.ds(rb, TB), H:] + hm[:, H:])
                pre_ref[pl.ds(rf, TB), :H] = h_f
                pre_ref[pl.ds(rb, TB), H:] = h_b
                return jnp.concatenate([h_f, h_b], axis=-1)

            lax.fori_loop(0, T, step, jnp.zeros((TB, H2), jnp.float32), unroll=unroll)

        # (3) Single FC matmul over the in-place hidden buffer; lane-dense output.
        out2d = (jnp.dot(pre_ref[...].astype(mm_dtype), wfc_ref[...],
                         preferred_element_type=jnp.float32) + bfc_ref[...])
        out_ref[...] = out2d.reshape(T, TB, -1)

    return kernel


def rnn_ate_forward(token_ids, params, *, batch_block=None, use_bf16=None,
                    split_recurrence=None):
    """token_ids: (B, T) int32 -> logits (B, T, O) float32."""
    emb_tbl = params["embedding"]                      # (V, E)  frozen pretrained
    B, T = token_ids.shape
    E = emb_tbl.shape[1]
    H = params["whh_f"].shape[0]
    O = params["wfc"].shape[0]

    kind = _device_kind()
    if use_bf16 is None:
        use_bf16 = True                                # bf16-native MXU everywhere
    if split_recurrence is None:
        split_recurrence = "v5" in kind                # 128x128 MXU: skip zero blocks
    n_cores = 2 if ("v7" in kind or kind.startswith("tpu v4")) else 1
    mm_dtype = jnp.bfloat16 if use_bf16 else jnp.float32

    # ---- tile-aligned padded sizes -----------------------------------------
    B_pad = _round_up(B, 8)
    E_pad = _round_up(E, 128)
    H_pad = _round_up(H, 128)
    O_pad = _round_up(O, 128)

    if batch_block is None:
        # Size TB for MXU row occupancy in the serial recurrence, but keep at
        # least n_cores grid steps so the "parallel" batch axis shards the TCs.
        tb_target = 128 if "v5" in kind else 256
        TB = min(B_pad, tb_target)
        if n_cores >= 2 and B_pad // TB < n_cores and B_pad >= 16:
            TB = _round_up(B_pad // n_cores, 8)
    else:
        TB = _round_up(batch_block, 8)
    B_pad = _round_up(B_pad, TB)

    # Embedding gather (frozen table) stays in XLA; pad to (T, B_pad, E_pad).
    x = jnp.take(emb_tbl, token_ids, axis=0).astype(jnp.float32)    # (B, T, E)
    x = jnp.transpose(x, (1, 0, 2))                                  # (T, B, E)
    x = jnp.pad(x, ((0, 0), (0, B_pad - B), (0, E_pad - E))).astype(mm_dtype)

    def pad2(w, r, c):
        return jnp.pad(w, ((0, r - w.shape[0]), (0, c - w.shape[1])))

    # PyTorch computes x @ W_ih.T and h @ W_hh.T; pre-transpose so the kernel
    # does plain row-major matmuls.  b_ih + b_hh fold into one bias per dir.
    wih = jnp.concatenate(
        [pad2(params["wih_f"].T, E_pad, H_pad),
         pad2(params["wih_b"].T, E_pad, H_pad)], axis=1).astype(mm_dtype)
    b_in = jnp.concatenate(
        [jnp.pad(params["bih_f"] + params["bhh_f"], (0, H_pad - H)),
         jnp.pad(params["bih_b"] + params["bhh_b"], (0, H_pad - H))]
    ).reshape(1, 2 * H_pad).astype(jnp.float32)

    whh_f = pad2(params["whh_f"].T, H_pad, H_pad)
    whh_b = pad2(params["whh_b"].T, H_pad, H_pad)
    if split_recurrence:
        whh = jnp.stack([whh_f, whh_b]).astype(jnp.float32)          # (2, H_pad, H_pad)
        whh_shape = (2, H_pad, H_pad)
        whh_elems = 2 * H_pad * H_pad
    else:
        zero = jnp.zeros((H_pad, H_pad), jnp.float32)
        whh = jnp.block([[whh_f, zero], [zero, whh_b]]).astype(jnp.float32)
        whh_shape = (2 * H_pad, 2 * H_pad)
        whh_elems = 4 * H_pad * H_pad

    wfc_t = params["wfc"].T                                          # (2H, O)
    wfc = jnp.concatenate([pad2(wfc_t[:H], H_pad, O_pad),
                           pad2(wfc_t[H:], H_pad, O_pad)], axis=0).astype(mm_dtype)
    bfc = jnp.pad(params["bfc"], (0, O_pad - O)).reshape(1, O_pad).astype(jnp.float32)

    # ---- generation-aware VMEM budget ---------------------------------------
    w_bytes = 2 if use_bf16 else 4
    vmem_est = (2 * T * TB * E_pad * w_bytes            # x block (double-buffered)
                + 2 * T * TB * O_pad * 4                # out block (double-buffered)
                + T * TB * 2 * H_pad * 4                # pre/hidden scratch (in-place)
                + E_pad * 2 * H_pad * w_bytes           # wih   (single-buffered)
                + whh_elems * 4                         # whh   (single-buffered, f32)
                + 2 * H_pad * O_pad * w_bytes           # wfc   (single-buffered)
                + (2 * H_pad + O_pad) * 4)              # biases
    phys = _vmem_physical_bytes(kind)
    cap = (52 << 20) if phys <= (64 << 20) else (96 << 20)
    vmem_limit = int(min(max(vmem_est * 5 // 4 + (2 << 20), 16 << 20), cap))

    unroll = True if T <= 16 else 4
    kernel = _make_birnn_kernel(split_recurrence, unroll)
    grid = (B_pad // TB,)

    out_padded = pl.pallas_call(
        kernel,
        out_shape=jax.ShapeDtypeStruct((T, B_pad, O_pad), jnp.float32),
        grid=grid,
        in_specs=[
            pl.BlockSpec((T, TB, E_pad), lambda b: (0, b, 0)),
            _invariant_spec((E_pad, 2 * H_pad)),
            _invariant_spec((1, 2 * H_pad)),
            _invariant_spec(whh_shape),
            _invariant_spec((2 * H_pad, O_pad)),
            _invariant_spec((1, O_pad)),
        ],
        out_specs=pl.BlockSpec((T, TB, O_pad), lambda b: (0, b, 0)),
        scratch_shapes=[pltpu.VMEM((T * TB, 2 * H_pad), jnp.float32)],
        compiler_params=pltpu.CompilerParams(
            dimension_semantics=("parallel",),
            vmem_limit_bytes=vmem_limit,
        ),
    )(x, wih, b_in, whh, wfc, bfc)

    # Strip padding, back to batch-first.
    return jnp.transpose(out_padded[:, :B, :O], (1, 0, 2))           # (B, T, O)


def reference_forward(token_ids, params):
    """Pure-JAX reference mirroring PyTorch nn.RNN(bidirectional=True)+Linear."""
    emb = jnp.take(params["embedding"], token_ids, axis=0)   # (B, T, E)
    B, T, E = emb.shape
    H = params["whh_f"].shape[0]
    xs = jnp.transpose(emb, (1, 0, 2))                       # (T, B, E)

    def run_dir(w_ih, w_hh, b_ih, b_hh, seq):
        def body(h, x_t):
            h_new = jnp.tanh(x_t @ w_ih.T + b_ih + h @ w_hh.T + b_hh)
            return h_new, h_new
        _, hs = lax.scan(body, jnp.zeros((B, H), jnp.float32), seq)
        return hs                                            # (T, B, H)

    hf = run_dir(params["wih_f"], params["whh_f"], params["bih_f"], params["bhh_f"], xs)
    hb = run_dir(params["wih_b"], params["whh_b"], params["bih_b"], params["bhh_b"], xs[::-1])[::-1]
    h = jnp.concatenate([hf, hb], axis=-1)                   # (T, B, 2H)
    out = h @ params["wfc"].T + params["bfc"]                # (T, B, O)
    return jnp.transpose(out, (1, 0, 2))                     # (B, T, O)


def init_params(key, vocab_size, embedding_dim, hidden_dim, output_dim):
    ks = jax.random.split(key, 12)
    u = lambda k, shape, bound: jax.random.uniform(
        k, shape, jnp.float32, minval=-bound, maxval=bound)
    rnn_b = 1.0 / jnp.sqrt(hidden_dim)
    fc_b = 1.0 / jnp.sqrt(2 * hidden_dim)
    return {
        # frozen "pretrained" embedding table (synthetic, deterministic)
        "embedding": jax.random.normal(ks[0], (vocab_size, embedding_dim), jnp.float32),
        # forward direction
        "wih_f": u(ks[1], (hidden_dim, embedding_dim), rnn_b),
        "whh_f": u(ks[2], (hidden_dim, hidden_dim), rnn_b),
        "bih_f": u(ks[3], (hidden_dim,), rnn_b),
        "bhh_f": u(ks[4], (hidden_dim,), rnn_b),
        # backward direction
        "wih_b": u(ks[5], (hidden_dim, embedding_dim), rnn_b),
        "whh_b": u(ks[6], (hidden_dim, hidden_dim), rnn_b),
        "bih_b": u(ks[7], (hidden_dim,), rnn_b),
        "bhh_b": u(ks[8], (hidden_dim,), rnn_b),
        # fc: Linear(2H -> O)
        "wfc": u(ks[9], (output_dim, 2 * hidden_dim), fc_b),
        "bfc": u(ks[10], (output_dim,), fc_b),
    }


if __name__ == "__main__":
    VOCAB, E, H, O = 50, 32, 32, 8
    B, T = 2, 8

    key = jax.random.PRNGKey(0)
    k_params, k_tok = jax.random.split(key)
    params = init_params(k_params, VOCAB, E, H, O)
    token_ids = jax.random.randint(k_tok, (B, T), 0, VOCAB, dtype=jnp.int32)

    ref = jax.block_until_ready(reference_forward(token_ids, params))

    # Exact f32 path — exercises BOTH recurrence variants (fused wide matmul
    # for v6e/v7x, split two-carry for v5e) regardless of the local chip.
    for split in (False, True):
        out = jax.block_until_ready(
            rnn_ate_forward(token_ids, params, use_bf16=False, split_recurrence=split))
        assert out.shape == (B, T, O), out.shape
        err = float(jnp.max(jnp.abs(out - ref)))
        assert jnp.allclose(out, ref, rtol=1e-3, atol=1e-3), (
            "f32 (split=%s) mismatch vs reference, max abs err = %e" % (split, err))

    # bf16-MXU fast path (default dispatch): operands of the two big matmuls
    # are bf16 with f32 accumulation -> tolerance widened for operand rounding.
    out_bf16 = jax.block_until_ready(rnn_ate_forward(token_ids, params))
    assert out_bf16.shape == (B, T, O), out_bf16.shape
    err = float(jnp.max(jnp.abs(out_bf16 - ref)))
    assert jnp.allclose(out_bf16, ref, rtol=2e-2, atol=2e-2), (
        "bf16 mismatch vs reference, max abs err = %e" % err)

    print("KERNEL_OK")
</pallas_src>

<mosaic_0001>
module attributes {stable_mosaic.version = 11 : i64} {
  func.func @kernel(%arg0: i32, %arg1: memref<8x8x128xf32, #tpu.memory_space<vmem>>, %arg2: memref<128x256xf32, #tpu.memory_space<vmem>>, %arg3: memref<1x256xf32, #tpu.memory_space<vmem>>, %arg4: memref<256x256xf32, #tpu.memory_space<vmem>>, %arg5: memref<256x128xf32, #tpu.memory_space<vmem>>, %arg6: memref<1x128xf32, #tpu.memory_space<vmem>>, %arg7: memref<8x8x128xf32, #tpu.memory_space<vmem>>, %arg8: memref<64x256xf32, #tpu.memory_space<vmem>>) attributes {dimension_semantics = [#tpu.dimension_semantics<parallel>], iteration_bounds = array<i64: 1>, scalar_prefetch = 0 : i64, scratch_operands = 1 : i64, tpu.core_type = #tpu.core_type<tc>, window_params = [{transform_indices = @transform_0, window_bounds = array<i64: 8, 8, 128>}, {pipeline_mode = #tpu.pipeline_mode<synchronous>, transform_indices = @transform_1, window_bounds = array<i64: 128, 256>}, {pipeline_mode = #tpu.pipeline_mode<synchronous>, transform_indices = @transform_2, window_bounds = array<i64: 1, 256>}, {pipeline_mode = #tpu.pipeline_mode<synchronous>, transform_indices = @transform_3, window_bounds = array<i64: 256, 256>}, {pipeline_mode = #tpu.pipeline_mode<synchronous>, transform_indices = @transform_4, window_bounds = array<i64: 256, 128>}, {pipeline_mode = #tpu.pipeline_mode<synchronous>, transform_indices = @transform_5, window_bounds = array<i64: 1, 128>}, {transform_indices = @transform_6, window_bounds = array<i64: 8, 8, 128>}]} {
    %c0 = arith.constant 0 : index
    %c0_0 = arith.constant 0 : index
    %c0_1 = arith.constant 0 : index
    %0 = vector.load %arg1[%c0, %c0_0, %c0_1] : memref<8x8x128xf32, #tpu.memory_space<vmem>>, vector<8x8x128xf32>
    %1 = vector.shape_cast %0 : vector<8x8x128xf32> to vector<64x128xf32>
    %c0_2 = arith.constant 0 : index
    %c0_3 = arith.constant 0 : index
    %2 = vector.load %arg2[%c0_2, %c0_3] : memref<128x256xf32, #tpu.memory_space<vmem>>, vector<128x256xf32>
    %cst = arith.constant dense<0.000000e+00> : vector<64x256xf32>
    %3 = tpu.matmul %1, %2, %cst {dimension_numbers = #tpu.dot_dimension_numbers<[1], [0], [0], [1], [0, 0, 1, 1], [], []>} : vector<64x128xf32>, vector<128x256xf32>, vector<64x256xf32> -> vector<64x256xf32>
    %c0_4 = arith.constant 0 : index
    %c0_5 = arith.constant 0 : index
    %4 = vector.load %arg3[%c0_4, %c0_5] : memref<1x256xf32, #tpu.memory_space<vmem>>, vector<1x256xf32>
    %5 = vector.broadcast %4 : vector<1x256xf32> to vector<64x256xf32>
    %6 = arith.addf %3, %5 : vector<64x256xf32>
    %c0_6 = arith.constant 0 : index
    %c0_7 = arith.constant 0 : index
    %7 = vector.load %arg8[%c0_6, %c0_7] : memref<64x256xf32, #tpu.memory_space<vmem>>, vector<64x256xf32>
    tpu.vector_store %arg8[%c0_6, %c0_7], %6 {strides = array<i32>} : memref<64x256xf32, #tpu.memory_space<vmem>>, vector<64x256xf32>,
    %c0_8 = arith.constant 0 : index
    %c0_9 = arith.constant 0 : index
    %8 = vector.load %arg4[%c0_8, %c0_9] : memref<256x256xf32, #tpu.memory_space<vmem>>, vector<256x256xf32>
    %cst_10 = arith.constant 0.000000e+00 : f32
    %9 = vector.broadcast %cst_10 : f32 to vector<8x256xf32>
    %c0_i32 = arith.constant 0 : i32
    %c8_i32 = arith.constant 8 : i32
    %10 = arith.muli %c0_i32, %c8_i32 : i32
    %11 = tpu.assume_multiple %10, 8 : i32
    %c7_i32 = arith.constant 7 : i32
    %12 = arith.subi %c7_i32, %c0_i32 : i32
    %c8_i32_11 = arith.constant 8 : i32
    %13 = arith.muli %12, %c8_i32_11 : i32
    %14 = tpu.assume_multiple %13, 8 : i32
    %cst_12 = arith.constant dense<0.000000e+00> : vector<8x256xf32>
    %15 = tpu.matmul %9, %8, %cst_12 {dimension_numbers = #tpu.dot_dimension_numbers<[1], [0], [0], [1], [0, 0, 1, 1], [], []>} : vector<8x256xf32>, vector<256x256xf32>, vector<8x256xf32> -> vector<8x256xf32>
    %16 = arith.index_cast %11 : i32 to index
    %c0_13 = arith.constant 0 : index
    %17 = vector.load %arg8[%16, %c0_13] : memref<64x256xf32, #tpu.memory_space<vmem>>, vector<8x128xf32>
    %18 = vector.extract_strided_slice %15 {offsets = [0, 0], sizes = [8, 128], strides = [1, 1]} : vector<8x256xf32> to vector<8x128xf32>
    %19 = arith.addf %17, %18 : vector<8x128xf32>
    %20 = math.tanh %19 : vector<8x128xf32>
    %21 = arith.index_cast %14 : i32 to index
    %c128 = arith.constant 128 : index
    %22 = vector.load %arg8[%21, %c128] : memref<64x256xf32, #tpu.memory_space<vmem>>, vector<8x128xf32>
    %23 = vector.extract_strided_slice %15 {offsets = [0, 128], sizes = [8, 128], strides = [1, 1]} : vector<8x256xf32> to vector<8x128xf32>
    %24 = arith.addf %22, %23 : vector<8x128xf32>
    %25 = math.tanh %24 : vector<8x128xf32>
    %26 = arith.index_cast %11 : i32 to index
    %c0_14 = arith.constant 0 : index
    %27 = vector.load %arg8[%26, %c0_14] : memref<64x256xf32, #tpu.memory_space<vmem>>, vector<8x128xf32>
    tpu.vector_store %arg8[%26, %c0_14], %20 {strides = array<i32>} : memref<64x256xf32, #tpu.memory_space<vmem>>, vector<8x128xf32>,
    %28 = arith.index_cast %14 : i32 to index
    %c128_15 = arith.constant 128 : index
    %29 = vector.load %arg8[%28, %c128_15] : memref<64x256xf32, #tpu.memory_space<vmem>>, vector<8x128xf32>
    tpu.vector_store %arg8[%28, %c128_15], %25 {strides = array<i32>} : memref<64x256xf32, #tpu.memory_space<vmem>>, vector<8x128xf32>,
    %30 = tpu.concatenate %20, %25 in 1 : vector<8x128xf32>, vector<8x128xf32> -> vector<8x256xf32>
    %c1_i32 = arith.constant 1 : i32
    %c8_i32_16 = arith.constant 8 : i32
    %31 = arith.muli %c1_i32, %c8_i32_16 : i32
    %32 = tpu.assume_multiple %31, 8 : i32
    %c7_i32_17 = arith.constant 7 : i32
    %33 = arith.subi %c7_i32_17, %c1_i32 : i32
    %c8_i32_18 = arith.constant 8 : i32
    %34 = arith.muli %33, %c8_i32_18 : i32
    %35 = tpu.assume_multiple %34, 8 : i32
    %cst_19 = arith.constant dense<0.000000e+00> : vector<8x256xf32>
    %36 = tpu.matmul %30, %8, %cst_19 {dimension_numbers = #tpu.dot_dimension_numbers<[1], [0], [0], [1], [0, 0, 1, 1], [], []>} : vector<8x256xf32>, vector<256x256xf32>, vector<8x256xf32> -> vector<8x256xf32>
    %37 = arith.index_cast %32 : i32 to index
    %c0_20 = arith.constant 0 : index
    %38 = vector.load %arg8[%37, %c0_20] : memref<64x256xf32, #tpu.memory_space<vmem>>, vector<8x128xf32>
    %39 = vector.extract_strided_slice %36 {offsets = [0, 0], sizes = [8, 128], strides = [1, 1]} : vector<8x256xf32> to vector<8x128xf32>
    %40 = arith.addf %38, %39 : vector<8x128xf32>
    %41 = math.tanh %40 : vector<8x128xf32>
    %42 = arith.index_cast %35 : i32 to index
    %c128_21 = arith.constant 128 : index
    %43 = vector.load %arg8[%42, %c128_21] : memref<64x256xf32, #tpu.memory_space<vmem>>, vector<8x128xf32>
    %44 = vector.extract_strided_slice %36 {offsets = [0, 128], sizes = [8, 128], strides = [1, 1]} : vector<8x256xf32> to vector<8x128xf32>
    %45 = arith.addf %43, %44 : vector<8x128xf32>
    %46 = math.tanh %45 : vector<8x128xf32>
    %47 = arith.index_cast %32 : i32 to index
    %c0_22 = arith.constant 0 : index
    %48 = vector.load %arg8[%47, %c0_22] : memref<64x256xf32, #tpu.memory_space<vmem>>, vector<8x128xf32>
    tpu.vector_store %arg8[%47, %c0_22], %41 {strides = array<i32>} : memref<64x256xf32, #tpu.memory_space<vmem>>, vector<8x128xf32>,
    %49 = arith.index_cast %35 : i32 to index
    %c128_23 = arith.constant 128 : index
    %50 = vector.load %arg8[%49, %c128_23] : memref<64x256xf32, #tpu.memory_space<vmem>>, vector<8x128xf32>
    tpu.vector_store %arg8[%49, %c128_23], %46 {strides = array<i32>} : memref<64x256xf32, #tpu.memory_space<vmem>>, vector<8x128xf32>,
    %51 = tpu.concatenate %41, %46 in 1 : vector<8x128xf32>, vector<8x128xf32> -> vector<8x256xf32>
    %c2_i32 = arith.constant 2 : i32
    %c8_i32_24 = arith.constant 8 : i32
    %52 = arith.muli %c2_i32, %c8_i32_24 : i32
    %53 = tpu.assume_multiple %52, 8 : i32
    %c7_i32_25 = arith.constant 7 : i32
    %54 = arith.subi %c7_i32_25, %c2_i32 : i32
    %c8_i32_26 = arith.constant 8 : i32
    %55 = arith.muli %54, %c8_i32_26 : i32
    %56 = tpu.assume_multiple %55, 8 : i32
    %cst_27 = arith.constant dense<0.000000e+00> : vector<8x256xf32>
    %57 = tpu.matmul %51, %8, %cst_27 {dimension_numbers = #tpu.dot_dimension_numbers<[1], [0], [0], [1], [0, 0, 1, 1], [], []>} : vector<8x256xf32>, vector<256x256xf32>, vector<8x256xf32> -> vector<8x256xf32>
    %58 = arith.index_cast %53 : i32 to index
    %c0_28 = arith.constant 0 : index
    %59 = vector.load %arg8[%58, %c0_28] : memref<64x256xf32, #tpu.memory_space<vmem>>, vector<8x128xf32>
    %60 = vector.extract_strided_slice %57 {offsets = [0, 0], sizes = [8, 128], strides = [1, 1]} : vector<8x256xf32> to vector<8x128xf32>
    %61 = arith.addf %59, %60 : vector<8x128xf32>
    %62 = math.tanh %61 : vector<8x128xf32>
    %63 = arith.index_cast %56 : i32 to index
    %c128_29 = arith.constant 128 : index
    %64 = vector.load %arg8[%63, %c128_29] : memref<64x256xf32, #tpu.memory_space<vmem>>, vector<8x128xf32>
    %65 = vector.extract_strided_slice %57 {offsets = [0, 128], sizes = [8, 128], strides = [1, 1]} : vector<8x256xf32> to vector<8x128xf32>
    %66 = arith.addf %64, %65 : vector<8x128xf32>
    %67 = math.tanh %66 : vector<8x128xf32>
    %68 = arith.index_cast %53 : i32 to index
    %c0_30 = arith.constant 0 : index
    %69 = vector.load %arg8[%68, %c0_30] : memref<64x256xf32, #tpu.memory_space<vmem>>, vector<8x128xf32>
    tpu.vector_store %arg8[%68, %c0_30], %62 {strides = array<i32>} : memref<64x256xf32, #tpu.memory_space<vmem>>, vector<8x128xf32>,
    %70 = arith.index_cast %56 : i32 to index
    %c128_31 = arith.constant 128 : index
    %71 = vector.load %arg8[%70, %c128_31] : memref<64x256xf32, #tpu.memory_space<vmem>>, vector<8x128xf32>
    tpu.vector_store %arg8[%70, %c128_31], %67 {strides = array<i32>} : memref<64x256xf32, #tpu.memory_space<vmem>>, vector<8x128xf32>,
    %72 = tpu.concatenate %62, %67 in 1 : vector<8x128xf32>, vector<8x128xf32> -> vector<8x256xf32>
    %c3_i32 = arith.constant 3 : i32
    %c8_i32_32 = arith.constant 8 : i32
    %73 = arith.muli %c3_i32, %c8_i32_32 : i32
    %74 = tpu.assume_multiple %73, 8 : i32
    %c7_i32_33 = arith.constant 7 : i32
    %75 = arith.subi %c7_i32_33, %c3_i32 : i32
    %c8_i32_34 = arith.constant 8 : i32
    %76 = arith.muli %75, %c8_i32_34 : i32
    %77 = tpu.assume_multiple %76, 8 : i32
    %cst_35 = arith.constant dense<0.000000e+00> : vector<8x256xf32>
    %78 = tpu.matmul %72, %8, %cst_35 {dimension_numbers = #tpu.dot_dimension_numbers<[1], [0], [0], [1], [0, 0, 1, 1], [], []>} : vector<8x256xf32>, vector<256x256xf32>, vector<8x256xf32> -> vector<8x256xf32>
    %79 = arith.index_cast %74 : i32 to index
    %c0_36 = arith.constant 0 : index
    %80 = vector.load %arg8[%79, %c0_36] : memref<64x256xf32, #tpu.memory_space<vmem>>, vector<8x128xf32>
    %81 = vector.extract_strided_slice %78 {offsets = [0, 0], sizes = [8, 128], strides = [1, 1]} : vector<8x256xf32> to vector<8x128xf32>
    %82 = arith.addf %80, %81 : vector<8x128xf32>
    %83 = math.tanh %82 : vector<8x128xf32>
    %84 = arith.index_cast %77 : i32 to index
    %c128_37 = arith.constant 128 : index
    %85 = vector.load %arg8[%84, %c128_37] : memref<64x256xf32, #tpu.memory_space<vmem>>, vector<8x128xf32>
    %86 = vector.extract_strided_slice %78 {offsets = [0, 128], sizes = [8, 128], strides = [1, 1]} : vector<8x256xf32> to vector<8x128xf32>
    %87 = arith.addf %85, %86 : vector<8x128xf32>
    %88 = math.tanh %87 : vector<8x128xf32>
    %89 = arith.index_cast %74 : i32 to index
    %c0_38 = arith.constant 0 : index
    %90 = vector.load %arg8[%89, %c0_38] : memref<64x256xf32, #tpu.memory_space<vmem>>, vector<8x128xf32>
    tpu.vector_store %arg8[%89, %c0_38], %83 {strides = array<i32>} : memref<64x256xf32, #tpu.memory_space<vmem>>, vector<8x128xf32>,
    %91 = arith.index_cast %77 : i32 to index
    %c128_39 = arith.constant 128 : index
    %92 = vector.load %arg8[%91, %c128_39] : memref<64x256xf32, #tpu.memory_space<vmem>>, vector<8x128xf32>
    tpu.vector_store %arg8[%91, %c128_39], %88 {strides = array<i32>} : memref<64x256xf32, #tpu.memory_space<vmem>>, vector<8x128xf32>,
    %93 = tpu.concatenate %83, %88 in 1 : vector<8x128xf32>, vector<8x128xf32> -> vector<8x256xf32>
    %c4_i32 = arith.constant 4 : i32
    %c8_i32_40 = arith.constant 8 : i32
    %94 = arith.muli %c4_i32, %c8_i32_40 : i32
    %95 = tpu.assume_multiple %94, 8 : i32
    %c7_i32_41 = arith.constant 7 : i32
    %96 = arith.subi %c7_i32_41, %c4_i32 : i32
    %c8_i32_42 = arith.constant 8 : i32
    %97 = arith.muli %96, %c8_i32_42 : i32
    %98 = tpu.assume_multiple %97, 8 : i32
    %cst_43 = arith.constant dense<0.000000e+00> : vector<8x256xf32>
    %99 = tpu.matmul %93, %8, %cst_43 {dimension_numbers = #tpu.dot_dimension_numbers<[1], [0], [0], [1], [0, 0, 1, 1], [], []>} : vector<8x256xf32>, vector<256x256xf32>, vector<8x256xf32> -> vector<8x256xf32>
    %100 = arith.index_cast %95 : i32 to index
    %c0_44 = arith.constant 0 : index
    %101 = vector.load %arg8[%100, %c0_44] : memref<64x256xf32, #tpu.memory_space<vmem>>, vector<8x128xf32>
    %102 = vector.extract_strided_slice %99 {offsets = [0, 0], sizes = [8, 128], strides = [1, 1]} : vector<8x256xf32> to vector<8x128xf32>
    %103 = arith.addf %101, %102 : vector<8x128xf32>
    %104 = math.tanh %103 : vector<8x128xf32>
    %105 = arith.index_cast %98 : i32 to index
    %c128_45 = arith.constant 128 : index
    %106 = vector.load %arg8[%105, %c128_45] : memref<64x256xf32, #tpu.memory_space<vmem>>, vector<8x128xf32>
    %107 = vector.extract_strided_slice %99 {offsets = [0, 128], sizes = [8, 128], strides = [1, 1]} : vector<8x256xf32> to vector<8x128xf32>
    %108 = arith.addf %106, %107 : vector<8x128xf32>
    %109 = math.tanh %108 : vector<8x128xf32>
    %110 = arith.index_cast %95 : i32 to index
    %c0_46 = arith.constant 0 : index
    %111 = vector.load %arg8[%110, %c0_46] : memref<64x256xf32, #tpu.memory_space<vmem>>, vector<8x128xf32>
    tpu.vector_store %arg8[%110, %c0_46], %104 {strides = array<i32>} : memref<64x256xf32, #tpu.memory_space<vmem>>, vector<8x128xf32>,
    %112 = arith.index_cast %98 : i32 to index
    %c128_47 = arith.constant 128 : index
    %113 = vector.load %arg8[%112, %c128_47] : memref<64x256xf32, #tpu.memory_space<vmem>>, vector<8x128xf32>
    tpu.vector_store %arg8[%112, %c128_47], %109 {strides = array<i32>} : memref<64x256xf32, #tpu.memory_space<vmem>>, vector<8x128xf32>,
    %114 = tpu.concatenate %104, %109 in 1 : vector<8x128xf32>, vector<8x128xf32> -> vector<8x256xf32>
    %c5_i32 = arith.constant 5 : i32
    %c8_i32_48 = arith.constant 8 : i32
    %115 = arith.muli %c5_i32, %c8_i32_48 : i32
    %116 = tpu.assume_multiple %115, 8 : i32
    %c7_i32_49 = arith.constant 7 : i32
    %117 = arith.subi %c7_i32_49, %c5_i32 : i32
    %c8_i32_50 = arith.constant 8 : i32
    %118 = arith.muli %117, %c8_i32_50 : i32
    %119 = tpu.assume_multiple %118, 8 : i32
    %cst_51 = arith.constant dense<0.000000e+00> : vector<8x256xf32>
    %120 = tpu.matmul %114, %8, %cst_51 {dimension_numbers = #tpu.dot_dimension_numbers<[1], [0], [0], [1], [0, 0, 1, 1], [], []>} : vector<8x256xf32>, vector<256x256xf32>, vector<8x256xf32> -> vector<8x256xf32>
    %121 = arith.index_cast %116 : i32 to index
    %c0_52 = arith.constant 0 : index
    %122 = vector.load %arg8[%121, %c0_52] : memref<64x256xf32, #tpu.memory_space<vmem>>, vector<8x128xf32>
    %123 = vector.extract_strided_slice %120 {offsets = [0, 0], sizes = [8, 128], strides = [1, 1]} : vector<8x256xf32> to vector<8x128xf32>
    %124 = arith.addf %122, %123 : vector<8x128xf32>
    %125 = math.tanh %124 : vector<8x128xf32>
    %126 = arith.index_cast %119 : i32 to index
    %c128_53 = arith.constant 128 : index
    %127 = vector.load %arg8[%126, %c128_53] : memref<64x256xf32, #tpu.memory_space<vmem>>, vector<8x128xf32>
    %128 = vector.extract_strided_slice %120 {offsets = [0, 128], sizes = [8, 128], strides = [1, 1]} : vector<8x256xf32> to vector<8x128xf32>
    %129 = arith.addf %127, %128 : vector<8x128xf32>
    %130 = math.tanh %129 : vector<8x128xf32>
    %131 = arith.index_cast %116 : i32 to index
    %c0_54 = arith.constant 0 : index
    %132 = vector.load %arg8[%131, %c0_54] : memref<64x256xf32, #tpu.memory_space<vmem>>, vector<8x128xf32>
    tpu.vector_store %arg8[%131, %c0_54], %125 {strides = array<i32>} : memref<64x256xf32, #tpu.memory_space<vmem>>, vector<8x128xf32>,
    %133 = arith.index_cast %119 : i32 to index
    %c128_55 = arith.constant 128 : index
    %134 = vector.load %arg8[%133, %c128_55] : memref<64x256xf32, #tpu.memory_space<vmem>>, vector<8x128xf32>
    tpu.vector_store %arg8[%133, %c128_55], %130 {strides = array<i32>} : memref<64x256xf32, #tpu.memory_space<vmem>>, vector<8x128xf32>,
    %135 = tpu.concatenate %125, %130 in 1 : vector<8x128xf32>, vector<8x128xf32> -> vector<8x256xf32>
    %c6_i32 = arith.constant 6 : i32
    %c8_i32_56 = arith.constant 8 : i32
    %136 = arith.muli %c6_i32, %c8_i32_56 : i32
    %137 = tpu.assume_multiple %136, 8 : i32
    %c7_i32_57 = arith.constant 7 : i32
    %138 = arith.subi %c7_i32_57, %c6_i32 : i32
    %c8_i32_58 = arith.constant 8 : i32
    %139 = arith.muli %138, %c8_i32_58 : i32
    %140 = tpu.assume_multiple %139, 8 : i32
    %cst_59 = arith.constant dense<0.000000e+00> : vector<8x256xf32>
    %141 = tpu.matmul %135, %8, %cst_59 {dimension_numbers = #tpu.dot_dimension_numbers<[1], [0], [0], [1], [0, 0, 1, 1], [], []>} : vector<8x256xf32>, vector<256x256xf32>, vector<8x256xf32> -> vector<8x256xf32>
    %142 = arith.index_cast %137 : i32 to index
    %c0_60 = arith.constant 0 : index
    %143 = vector.load %arg8[%142, %c0_60] : memref<64x256xf32, #tpu.memory_space<vmem>>, vector<8x128xf32>
    %144 = vector.extract_strided_slice %141 {offsets = [0, 0], sizes = [8, 128], strides = [1, 1]} : vector<8x256xf32> to vector<8x128xf32>
    %145 = arith.addf %143, %144 : vector<8x128xf32>
    %146 = math.tanh %145 : vector<8x128xf32>
    %147 = arith.index_cast %140 : i32 to index
    %c128_61 = arith.constant 128 : index
    %148 = vector.load %arg8[%147, %c128_61] : memref<64x256xf32, #tpu.memory_space<vmem>>, vector<8x128xf32>
    %149 = vector.extract_strided_slice %141 {offsets = [0, 128], sizes = [8, 128], strides = [1, 1]} : vector<8x256xf32> to vector<8x128xf32>
    %150 = arith.addf %148, %149 : vector<8x128xf32>
    %151 = math.tanh %150 : vector<8x128xf32>
    %152 = arith.index_cast %137 : i32 to index
    %c0_62 = arith.constant 0 : index
    %153 = vector.load %arg8[%152, %c0_62] : memref<64x256xf32, #tpu.memory_space<vmem>>, vector<8x128xf32>
    tpu.vector_store %arg8[%152, %c0_62], %146 {strides = array<i32>} : memref<64x256xf32, #tpu.memory_space<vmem>>, vector<8x128xf32>,
    %154 = arith.index_cast %140 : i32 to index
    %c128_63 = arith.constant 128 : index
    %155 = vector.load %arg8[%154, %c128_63] : memref<64x256xf32, #tpu.memory_space<vmem>>, vector<8x128xf32>
    tpu.vector_store %arg8[%154, %c128_63], %151 {strides = array<i32>} : memref<64x256xf32, #tpu.memory_space<vmem>>, vector<8x128xf32>,
    %156 = tpu.concatenate %146, %151 in 1 : vector<8x128xf32>, vector<8x128xf32> -> vector<8x256xf32>
    %c7_i32_64 = arith.constant 7 : i32
    %c8_i32_65 = arith.constant 8 : i32
    %157 = arith.muli %c7_i32_64, %c8_i32_65 : i32
    %158 = tpu.assume_multiple %157, 8 : i32
    %c7_i32_66 = arith.constant 7 : i32
    %159 = arith.subi %c7_i32_66, %c7_i32_64 : i32
    %c8_i32_67 = arith.constant 8 : i32
    %160 = arith.muli %159, %c8_i32_67 : i32
    %161 = tpu.assume_multiple %160, 8 : i32
    %cst_68 = arith.constant dense<0.000000e+00> : vector<8x256xf32>
    %162 = tpu.matmul %156, %8, %cst_68 {dimension_numbers = #tpu.dot_dimension_numbers<[1], [0], [0], [1], [0, 0, 1, 1], [], []>} : vector<8x256xf32>, vector<256x256xf32>, vector<8x256xf32> -> vector<8x256xf32>
    %163 = arith.index_cast %158 : i32 to index
    %c0_69 = arith.constant 0 : index
    %164 = vector.load %arg8[%163, %c0_69] : memref<64x256xf32, #tpu.memory_space<vmem>>, vector<8x128xf32>
    %165 = vector.extract_strided_slice %162 {offsets = [0, 0], sizes = [8, 128], strides = [1, 1]} : vector<8x256xf32> to vector<8x128xf32>
    %166 = arith.addf %164, %165 : vector<8x128xf32>
    %167 = math.tanh %166 : vector<8x128xf32>
    %168 = arith.index_cast %161 : i32 to index
    %c128_70 = arith.constant 128 : index
    %169 = vector.load %arg8[%168, %c128_70] : memref<64x256xf32, #tpu.memory_space<vmem>>, vector<8x128xf32>
    %170 = vector.extract_strided_slice %162 {offsets = [0, 128], sizes = [8, 128], strides = [1, 1]} : vector<8x256xf32> to vector<8x128xf32>
    %171 = arith.addf %169, %170 : vector<8x128xf32>
    %172 = math.tanh %171 : vector<8x128xf32>
    %173 = arith.index_cast %158 : i32 to index
    %c0_71 = arith.constant 0 : index
    %174 = vector.load %arg8[%173, %c0_71] : memref<64x256xf32, #tpu.memory_space<vmem>>, vector<8x128xf32>
    tpu.vector_store %arg8[%173, %c0_71], %167 {strides = array<i32>} : memref<64x256xf32, #tpu.memory_space<vmem>>, vector<8x128xf32>,
    %175 = arith.index_cast %161 : i32 to index
    %c128_72 = arith.constant 128 : index
    %176 = vector.load %arg8[%175, %c128_72] : memref<64x256xf32, #tpu.memory_space<vmem>>, vector<8x128xf32>
    tpu.vector_store %arg8[%175, %c128_72], %172 {strides = array<i32>} : memref<64x256xf32, #tpu.memory_space<vmem>>, vector<8x128xf32>,
    %177 = tpu.concatenate %167, %172 in 1 : vector<8x128xf32>, vector<8x128xf32> -> vector<8x256xf32>
    %c8_i32_73 = arith.constant 8 : i32
    %c0_74 = arith.constant 0 : index
    %c0_75 = arith.constant 0 : index
    %178 = vector.load %arg8[%c0_74, %c0_75] : memref<64x256xf32, #tpu.memory_space<vmem>>, vector<64x256xf32>
    %c0_76 = arith.constant 0 : index
    %c0_77 = arith.constant 0 : index
    %179 = vector.load %arg5[%c0_76, %c0_77] : memref<256x128xf32, #tpu.memory_space<vmem>>, vector<256x128xf32>
    %cst_78 = arith.constant dense<0.000000e+00> : vector<64x128xf32>
    %180 = tpu.matmul %178, %179, %cst_78 {dimension_numbers = #tpu.dot_dimension_numbers<[1], [0], [0], [1], [0, 0, 1, 1], [], []>} : vector<64x256xf32>, vector<256x128xf32>, vector<64x128xf32> -> vector<64x128xf32>
    %c0_79 = arith.constant 0 : index
    %c0_80 = arith.constant 0 : index
    %181 = vector.load %arg6[%c0_79, %c0_80] : memref<1x128xf32, #tpu.memory_space<vmem>>, vector<1x128xf32>
    %182 = vector.broadcast %181 : vector<1x128xf32> to vector<64x128xf32>
    %183 = arith.addf %180, %182 : vector<64x128xf32>
    %184 = vector.shape_cast %183 : vector<64x128xf32> to vector<8x8x128xf32>
    %c0_81 = arith.constant 0 : index
    %c0_82 = arith.constant 0 : index
    %c0_83 = arith.constant 0 : index
    %185 = vector.load %arg7[%c0_81, %c0_82, %c0_83] : memref<8x8x128xf32, #tpu.memory_space<vmem>>, vector<8x8x128xf32>
    tpu.vector_store %arg7[%c0_81, %c0_82, %c0_83], %184 {strides = array<i32>} : memref<8x8x128xf32, #tpu.memory_space<vmem>>, vector<8x8x128xf32>,
    return
  }
  func.func @transform_0(%arg0: i32) -> (i32, i32, i32) {
    %c0_i32 = arith.constant 0 : i32
    %c0_i32_0 = arith.constant 0 : i32
    %c0_i32_1 = arith.constant 0 : i32
    return %c0_i32, %arg0, %c0_i32_0 : i32, i32, i32
  }
  func.func @transform_1(%arg0: i32) -> (i32, i32) {
    %c0_i32 = arith.constant 0 : i32
    %c0_i32_0 = arith.constant 0 : i32
    %c0_i32_1 = arith.constant 0 : i32
    return %c0_i32, %c0_i32_0 : i32, i32
  }
  func.func @transform_2(%arg0: i32) -> (i32, i32) {
    %c0_i32 = arith.constant 0 : i32
    %c0_i32_0 = arith.constant 0 : i32
    %c0_i32_1 = arith.constant 0 : i32
    return %c0_i32, %c0_i32_0 : i32, i32
  }
  func.func @transform_3(%arg0: i32) -> (i32, i32) {
    %c0_i32 = arith.constant 0 : i32
    %c0_i32_0 = arith.constant 0 : i32
    %c0_i32_1 = arith.constant 0 : i32
    return %c0_i32, %c0_i32_0 : i32, i32
  }
  func.func @transform_4(%arg0: i32) -> (i32, i32) {
    %c0_i32 = arith.constant 0 : i32
    %c0_i32_0 = arith.constant 0 : i32
    %c0_i32_1 = arith.constant 0 : i32
    return %c0_i32, %c0_i32_0 : i32, i32
  }
  func.func @transform_5(%arg0: i32) -> (i32, i32) {
    %c0_i32 = arith.constant 0 : i32
    %c0_i32_0 = arith.constant 0 : i32
    %c0_i32_1 = arith.constant 0 : i32
    return %c0_i32, %c0_i32_0 : i32, i32
  }
  func.func @transform_6(%arg0: i32) -> (i32, i32, i32) {
    %c0_i32 = arith.constant 0 : i32
    %c0_i32_0 = arith.constant 0 : i32
    %c0_i32_1 = arith.constant 0 : i32
    return %c0_i32, %arg0, %c0_i32_0 : i32, i32, i32
  }
}

</mosaic_0001>

<bundles_post_ra>
// kernel: tpu_custom_call.1
= control target key start
LH: loop header
LB: loop body
LE: loop exit
PB: predicated region body
PF: predicated region fallthrough
CT: control target
= control target key end

     0   :  { %11 = vsyncpa [#allocation4], 0  ;;  %s2517_s0 = inlined_call_operand.hbm [shape: f32[8,8,128], index: 0, kind: input, shape index: {}]   ;;  %s2518_s1 = inlined_call_operand.hbm [shape: f32[128,256], index: 1, kind: input, shape index: {}]   ;;  %s2519_s2 = inlined_call_operand.vmem [shape: f32[1,256], index: 2, kind: input, shape index: {}]   ;;  %s2520_s3 = inlined_call_operand.hbm [shape: f32[256,256], index: 3, kind: input, shape index: {}]   ;;  %s2521_s4 = inlined_call_operand.hbm [shape: f32[256,128], index: 4, kind: input, shape index: {}]   ;;  %s2522_s5 = inlined_call_operand.vmem [shape: f32[1,128], index: 5, kind: input, shape index: {}]   ;;  %s2523_s6 = inlined_call_operand.hbm [shape: f32[8,8,128], index: 6, kind: output, shape index: {}]  }
   0x1   :  { %12 = vsyncpa [#allocation7], 0 }
   0x2   :  { %13 = vsyncpa [#allocation10], 0 }
   0x3   :  { %14 = vsyncpa [#allocation5], 0  ;;  %s1967_s21 = smov [#allocation6]   ;;  %s1849_s25 = scalar_lea.hbm %s2518_s1, 4096 }
   0x4   :  { %s32_s22 = sshll.u32 %s1967_s21, 4  ;;  %p1850_p0 = scmp.ne.s32.totalorder %s2518_s1, %s1849_s25  ;;  %s33_s22 = int_to_ptr.vmem [resolvable:$true] %s32_s22 }
   0x5   :  { %p1853_p1 = scmp.lt.u32.totalorder %s1849_s25, %s2518_s1 }
   0x7   :  { %p1855_p2 = pnand %p1853_p1, %p1850_p0 }
   0x9   :  { %1858 = shalt.err (!%p1855_p2)
}
   0xa   :  { %s1859_s30 = scalar_lea.vmem %s33_s22, 4096  ;;  %p1864_p4 = scmp.lt.s32.totalorder %s33_s22, %s33_s22 }
   0xb   :  { %p1860_p3 = scmp.ne.s32.totalorder %s33_s22, %s1859_s30  ;;  %p1865_p5 = scmp.lt.s32.totalorder %s1859_s30, %s1859_s30 }
   0xd   :  { %p1866_p6 = por %p1865_p5, %p1864_p4 }
   0xf   :  { %p1867_p7 = pnand %p1866_p6, %p1860_p3 }
  0x11   :  { %1870 = shalt.err (!%p1867_p7)
}
  0x12   :  { %s1968_s7 = smov 256   ;;  %s1969_s8 = smov 16  }
  0x13   :  { %38 = dma.hbm_to_vmem [thread:$0]  %s2518_s1, 4096, %s33_s22, [#allocation7], %s1968_s7, %s1968_s7, %s1969_s8  }
  0x14   :  { %s1970_s11 = smov [#allocation3]   ;;  %s1871_s15 = scalar_lea.hbm %s2517_s0, 1024 }
  0x15   :  { %s20_s12 = sshll.u32 %s1970_s11, 4  ;;  %p1872_p8 = scmp.ne.s32.totalorder %s2517_s0, %s1871_s15  ;;  %s21_s12 = int_to_ptr.vmem [resolvable:$true] %s20_s12 }
  0x16   :  { %p1875_p9 = scmp.lt.u32.totalorder %s1871_s15, %s2517_s0 }
  0x18   :  { %p1877_p10 = pnand %p1875_p9, %p1872_p8 }
  0x1a   :  { %1880 = shalt.err (!%p1877_p10)
}
  0x1b   :  { %s1881_s20 = scalar_lea.vmem %s21_s12, 1024  ;;  %p1886_p12 = scmp.lt.s32.totalorder %s21_s12, %s21_s12 }
  0x1c   :  { %p1882_p11 = scmp.ne.s32.totalorder %s21_s12, %s1881_s20  ;;  %p1887_p13 = scmp.lt.s32.totalorder %s1881_s20, %s1881_s20 }
  0x1e   :  { %p1888_p0 = por %p1887_p13, %p1886_p12 }
  0x20   :  { %p1889_p1 = pnand %p1888_p0, %p1882_p11 }
  0x22   :  { %1892 = shalt.err (!%p1889_p1)
}
  0x23   :  { %s1971_s1 = smov 128   ;;  %s1972_s21 = smov 8  }
  0x24   :  { %26 = dma.hbm_to_vmem [thread:$0]  %s2517_s0, 1024, %s21_s12, [#allocation4], %s1971_s1, %s1971_s1, %s1972_s21  }
  0x25   :  { %s1973_s24 = smov [#allocation8]   ;;  %s1974_s26 = smov [#allocation9]  }
  0x26   :  { %s46_s25 = sshll.u32 %s1973_s24, 4  ;;  %s58_s27 = sshll.u32 %s1974_s26, 4  ;;  %s47_s25 = int_to_ptr.vmem [resolvable:$true] %s46_s25  ;;  %s2042_s27 = int_to_ptr.vmem [resolvable:$true] %s58_s27 }
  0x27   :  { %s1893_s30 = scalar_lea.hbm %s2520_s3, 8192 }
  0x28   :  { %p1894_p2 = scmp.ne.s32.totalorder %s2520_s3, %s1893_s30  ;;  %p1897_p3 = scmp.lt.u32.totalorder %s1893_s30, %s2520_s3 }
  0x2a   :  { %p1899_p4 = pnand %p1897_p3, %p1894_p2 }
  0x2c   :  { %1902 = shalt.err (!%p1899_p4)
}
  0x2d   :  { %s1903_s0 = scalar_lea.vmem %s47_s25, 8192  ;;  %p1908_p6 = scmp.lt.s32.totalorder %s47_s25, %s47_s25 }
  0x2e   :  { %p1904_p5 = scmp.ne.s32.totalorder %s47_s25, %s1903_s0  ;;  %p1909_p7 = scmp.lt.s32.totalorder %s1903_s0, %s1903_s0 }
  0x30   :  { %p1910_p8 = por %p1909_p7, %p1908_p6 }
  0x32   :  { %p1911_p9 = pnand %p1910_p8, %p1904_p5 }
  0x34   :  { %1914 = shalt.err (!%p1911_p9)
}
  0x35   :  { %52 = dma.hbm_to_vmem [thread:$0]  %s2520_s3, 8192, %s47_s25, [#allocation7], %s1968_s7, %s1968_s7, %s1969_s8  }
  0x36   :  { %s1915_s17 = scalar_lea.hbm %s2521_s4, 4096 }
  0x37   :  { %p1916_p10 = scmp.ne.s32.totalorder %s2521_s4, %s1915_s17  ;;  %p1919_p11 = scmp.lt.u32.totalorder %s1915_s17, %s2521_s4 }
  0x39   :  { %p1921_p12 = pnand %p1919_p11, %p1916_p10 }
  0x3b   :  { %1924 = shalt.err (!%p1921_p12)
}
  0x3c   :  { %s1925_s23 = scalar_lea.vmem %s2042_s27, 4096  ;;  %p1930_p0 = scmp.lt.s32.totalorder %s2042_s27, %s2042_s27 }
  0x3d   :  { %p1926_p13 = scmp.ne.s32.totalorder %s2042_s27, %s1925_s23  ;;  %p1931_p1 = scmp.lt.s32.totalorder %s1925_s23, %s1925_s23 }
  0x3f   :  { %p1932_p2 = por %p1931_p1, %p1930_p0 }
  0x41   :  { %p1933_p3 = pnand %p1932_p2, %p1926_p13 }
  0x43   :  { %1936 = shalt.err (!%p1933_p3)
}
  0x44   :  { %64 = dma.hbm_to_vmem [thread:$0]  %s2521_s4, 4096, %s2042_s27, [#allocation10], %s1971_s1, %s1971_s1, %s1972_s21  }
  0x45   :  { %1959 = dma.done.wait [#allocation4], 1024  }
  0x46   :  { %1960 = vsyncadd [#allocation4], 4294966272 }
  0x47   :  { %1961 = dma.done.wait [#allocation7], 12288  }
  0x48   :  { %1962 = vsyncadd [#allocation7], 4294955008 }
  0x49   :  { %1963 = dma.done.wait [#allocation10], 4096  }
  0x4a   :  { %1964 = vsyncadd [#allocation10], 4294963200  ;;  %v1975_v0 = vmov 0.0   ;;  %v261_v1 = vld [vmem:[#allocation8 + $0x8] sm:$0xff]  ;;  %v263_v2 = vld [vmem:[#allocation8 + $0x18] sm:$0xff] }
  0x4b   :  { %195 = vmatprep.mubr.f32.mxu0 %v1975_v0  ;;  %388 = vmatprep.mubr.f32.mxu1 %v1975_v0  ;;  %v88_v3 = vld [vmem:[#allocation6 + $0x8] sm:$0xff]  ;;  %v2081_v4 = vpack.c.bf16 %v263_v2, %v261_v1  ;;  %v90_v5 = vld [vmem:[#allocation6 + $0x18] sm:$0xff]  ;;  %v260_v6 = vld [vmem:[#allocation8] sm:$0xff] }
  0x4c   :  { %v262_v7 = vld [vmem:[#allocation8 + $0x10] sm:$0xff]  ;;  %v1231_v8 = vpack.c.bf16 %v90_v5, %v88_v3  ;;  %v87_v10 = vld [vmem:[#allocation6] sm:$0xff]  ;;  %v265_v12 = vld [vmem:[#allocation8 + $0x28] sm:$0xff] }
  0x4d   :  { %v2083_v9 = vpack.c.bf16 %v262_v7, %v260_v6  ;;  %v89_v11 = vld [vmem:[#allocation6 + $0x10] sm:$0xff]  ;;  %1264 = vmatprep.subr.bf16.mxu1 %v2081_v4  ;;  %v267_v14 = vld [vmem:[#allocation8 + $0x38] sm:$0xff]  ;;  %v92_v15 = vld [vmem:[#allocation6 + $0x28] sm:$0xff] }
  0x4e   :  { %v1233_v13 = vpack.c.bf16 %v89_v11, %v87_v10  ;;  %v94_v16 = vld [vmem:[#allocation6 + $0x38] sm:$0xff]  ;;  %1232 = vmatprep.subr.bf16.mxu0 %v1231_v8  ;;  %v2087_v17 = vpack.c.bf16 %v267_v14, %v265_v12  ;;  %v264_v19 = vld [vmem:[#allocation8 + $0x20] sm:$0xff]  ;;  %v266_v20 = vld [vmem:[#allocation8 + $0x30] sm:$0xff] }
  0x4f   :  { %1266 = vmatpush1.bf16.msra.mxu1 %v2083_v9  ;;  %v1235_v18 = vpack.c.bf16 %v94_v16, %v92_v15  ;;  %v91_v21 = vld [vmem:[#allocation6 + $0x20] sm:$0xff]  ;;  %v2089_v22 = vpack.c.bf16 %v266_v20, %v264_v19  ;;  %v93_v23 = vld [vmem:[#allocation6 + $0x30] sm:$0xff]  ;;  %v269_v24 = vld [vmem:[#allocation8 + $0x48] sm:$0xff] }
  0x50   :  { %1234 = vmatpush1.bf16.msra.mxu0 %v1233_v13  ;;  %v271_v25 = vld [vmem:[#allocation8 + $0x58] sm:$0xff]  ;;  %1268 = vmatprep.subr.bf16.mxu1 %v2087_v17  ;;  %v1237_v26 = vpack.c.bf16 %v93_v23, %v91_v21  ;;  %v96_v28 = vld [vmem:[#allocation6 + $0x48] sm:$0xff]  ;;  %v268_v30 = vld [vmem:[#allocation8 + $0x40] sm:$0xff] }
  0x51   :  { %1236 = vmatprep.subr.bf16.mxu0 %v1235_v18  ;;  %v2092_v27 = vpack.c.bf16 %v271_v25, %v269_v24  ;;  %v98_v29 = vld [vmem:[#allocation6 + $0x58] sm:$0xff]  ;;  %v270_v32 = vld [vmem:[#allocation8 + $0x50] sm:$0xff]  ;;  %v95_v33 = vld [vmem:[#allocation6 + $0x40] sm:$0xff] }
  0x52   :  { %v1239_v31 = vpack.c.bf16 %v98_v29, %v96_v28  ;;  %v97_v34 = vld [vmem:[#allocation6 + $0x50] sm:$0xff]  ;;  %v2095_v35 = vpack.c.bf16 %v270_v32, %v268_v30  ;;  %v273_v36 = vld [vmem:[#allocation8 + $0x68] sm:$0xff]  ;;  %v275_v37 = vld [vmem:[#allocation8 + $0x78] sm:$0xff] }
  0x53   :  { %1270 = vmatpush1.bf16.msra.mxu1 %v2089_v22  ;;  %v100_v38 = vld [vmem:[#allocation6 + $0x68] sm:$0xff]  ;;  %v1241_v39 = vpack.c.bf16 %v97_v34, %v95_v33  ;;  %v2098_v40 = vpack.c.bf16 %v275_v37, %v273_v36  ;;  %v102_v41 = vld [vmem:[#allocation6 + $0x78] sm:$0xff]  ;;  %v272_v42 = vld [vmem:[#allocation8 + $0x60] sm:$0xff] }
  0x54   :  { %1238 = vmatpush1.bf16.msra.mxu0 %v1237_v26  ;;  %1272 = vmatprep.subr.bf16.mxu1 %v2092_v27  ;;  %v274_v43 = vld [vmem:[#allocation8 + $0x70] sm:$0xff]  ;;  %v1243_v44 = vpack.c.bf16 %v102_v41, %v100_v38  ;;  %v99_v45 = vld [vmem:[#allocation6 + $0x60] sm:$0xff]  ;;  %v277_v47 = vld [vmem:[#allocation8 + $0x88] sm:$0xff] }
  0x55   :  { %1240 = vmatprep.subr.bf16.mxu0 %v1239_v31  ;;  %v101_v46 = vld [vmem:[#allocation6 + $0x70] sm:$0xff]  ;;  %v279_v48 = vld [vmem:[#allocation8 + $0x98] sm:$0xff]  ;;  %v104_v49 = vld [vmem:[#allocation6 + $0x88] sm:$0xff]  ;;  %v2101_v51 = vpack.c.bf16 %v274_v43, %v272_v42 }
  0x56   :  { %v106_v50 = vld [vmem:[#allocation6 + $0x98] sm:$0xff]  ;;  %v1245_v52 = vpack.c.bf16 %v101_v46, %v99_v45  ;;  %v2104_v53 = vpack.c.bf16 %v279_v48, %v277_v47  ;;  %v276_v54 = vld [vmem:[#allocation8 + $0x80] sm:$0xff]  ;;  %v278_v55 = vld [vmem:[#allocation8 + $0x90] sm:$0xff] }
  0x57   :  { %1274 = vmatpush1.bf16.msra.mxu1 %v2095_v35  ;;  %v103_v56 = vld [vmem:[#allocation6 + $0x80] sm:$0xff]  ;;  %v1247_v57 = vpack.c.bf16 %v106_v50, %v104_v49  ;;  %v105_v58 = vld [vmem:[#allocation6 + $0x90] sm:$0xff]  ;;  %v281_v59 = vld [vmem:[#allocation8 + $0xa8] sm:$0xff]  ;;  %v2107_v63 = vpack.c.bf16 %v278_v55, %v276_v54 }
  0x58   :  { %1242 = vmatpush1.bf16.msra.mxu0 %v1241_v39  ;;  %1276 = vmatprep.subr.bf16.mxu1 %v2098_v40  ;;  %v283_v60 = vld [vmem:[#allocation8 + $0xb8] sm:$0xff]  ;;  %v108_v61 = vld [vmem:[#allocation6 + $0xa8] sm:$0xff]  ;;  %v1249_v1 = vpack.c.bf16 %v105_v58, %v103_v56  ;;  %v280_v3 = vld [vmem:[#allocation8 + $0xa0] sm:$0xff] }
  0x59   :  { %1244 = vmatprep.subr.bf16.mxu0 %v1243_v44  ;;  %v110_v62 = vld [vmem:[#allocation6 + $0xb8] sm:$0xff]  ;;  %v2110_v2 = vpack.c.bf16 %v283_v60, %v281_v59  ;;  %v282_v5 = vld [vmem:[#allocation8 + $0xb0] sm:$0xff]  ;;  %v107_v6 = vld [vmem:[#allocation6 + $0xa0] sm:$0xff] }
  0x5a   :  { %v1251_v7 = vpack.c.bf16 %v110_v62, %v108_v61  ;;  %v109_v8 = vld [vmem:[#allocation6 + $0xb0] sm:$0xff]  ;;  %v285_v10 = vld [vmem:[#allocation8 + $0xc8] sm:$0xff]  ;;  %v287_v11 = vld [vmem:[#allocation8 + $0xd8] sm:$0xff]  ;;  %v2113_v14 = vpack.c.bf16 %v282_v5, %v280_v3 }
  0x5b   :  { %1278 = vmatpush1.bf16.msra.mxu1 %v2101_v51  ;;  %v112_v12 = vld [vmem:[#allocation6 + $0xc8] sm:$0xff]  ;;  %v114_v13 = vld [vmem:[#allocation6 + $0xd8] sm:$0xff]  ;;  %v1253_v15 = vpack.c.bf16 %v109_v8, %v107_v6  ;;  %v2116_v16 = vpack.c.bf16 %v287_v11, %v285_v10  ;;  %v284_v18 = vld [vmem:[#allocation8 + $0xc0] sm:$0xff] }
  0x5c   :  { %1246 = vmatpush1.bf16.msra.mxu0 %v1245_v52  ;;  %1280 = vmatprep.subr.bf16.mxu1 %v2104_v53  ;;  %v286_v19 = vld [vmem:[#allocation8 + $0xd0] sm:$0xff]  ;;  %v111_v20 = vld [vmem:[#allocation6 + $0xc0] sm:$0xff]  ;;  %v1255_v21 = vpack.c.bf16 %v114_v13, %v112_v12  ;;  %v289_v24 = vld [vmem:[#allocation8 + $0xe8] sm:$0xff] }
  0x5d   :  { %1248 = vmatprep.subr.bf16.mxu0 %v1247_v57  ;;  %v113_v23 = vld [vmem:[#allocation6 + $0xd0] sm:$0xff]  ;;  %v291_v25 = vld [vmem:[#allocation8 + $0xf8] sm:$0xff]  ;;  %v116_v26 = vld [vmem:[#allocation6 + $0xe8] sm:$0xff]  ;;  %v2119_v29 = vpack.c.bf16 %v286_v19, %v284_v18 }
  0x5e   :  { %v118_v28 = vld [vmem:[#allocation6 + $0xf8] sm:$0xff]  ;;  %v1257_v30 = vpack.c.bf16 %v113_v23, %v111_v20  ;;  %v2122_v31 = vpack.c.bf16 %v291_v25, %v289_v24  ;;  %v288_v32 = vld [vmem:[#allocation8 + $0xe0] sm:$0xff]  ;;  %v290_v33 = vld [vmem:[#allocation8 + $0xf0] sm:$0xff] }
  0x5f   :  { %1282 = vmatpush1.bf16.msra.mxu1 %v2107_v63  ;;  %v115_v34 = vld [vmem:[#allocation6 + $0xe0] sm:$0xff]  ;;  %v1259_v36 = vpack.c.bf16 %v118_v28, %v116_v26  ;;  %v117_v37 = vld [vmem:[#allocation6 + $0xf0] sm:$0xff]  ;;  %v293_v38 = vld [vmem:[#allocation8 + $0x108] sm:$0xff]  ;;  %v2125_v41 = vpack.c.bf16 %v290_v33, %v288_v32 }
  0x60   :  { %1250 = vmatpush1.bf16.msra.mxu0 %v1249_v1  ;;  %1284 = vmatprep.subr.bf16.mxu1 %v2110_v2  ;;  %v295_v39 = vld [vmem:[#allocation8 + $0x118] sm:$0xff]  ;;  %v1261_v42 = vpack.c.bf16 %v117_v37, %v115_v34  ;;  %v292_v44 = vld [vmem:[#allocation8 + $0x100] sm:$0xff]  ;;  %v294_v45 = vld [vmem:[#allocation8 + $0x110] sm:$0xff] }
  0x61   :  { %1252 = vmatprep.subr.bf16.mxu0 %v1251_v7  ;;  %v2128_v43 = vpack.c.bf16 %v295_v39, %v293_v38  ;;  %v297_v46 = vld [vmem:[#allocation8 + $0x128] sm:$0xff]  ;;  %v299_v47 = vld [vmem:[#allocation8 + $0x138] sm:$0xff]  ;;  %v2131_v48 = vpack.c.bf16 %v294_v45, %v292_v44  ;;  %v79_v49 = vld [vmem:[#allocation3] sm:$0xff] }
  0x62   :  { %v2134_v50 = vpack.c.bf16 %v299_v47, %v297_v46  ;;  %v296_v52 = vld [vmem:[#allocation8 + $0x120] sm:$0xff]  ;;  %v298_v54 = vld [vmem:[#allocation8 + $0x130] sm:$0xff]  ;;  %v301_v55 = vld [vmem:[#allocation8 + $0x148] sm:$0xff] }
  0x63   :  { %1286 = vmatpush1.bf16.msra.mxu1 %v2113_v14  ;;  %v303_v56 = vld [vmem:[#allocation8 + $0x158] sm:$0xff]  ;;  %v2138_v57 = vpack.c.bf16 %v298_v54, %v296_v52  ;;  %v80_v58 = vld [vmem:[#allocation3 + $0x8] sm:$0xff]  ;;  %v300_v60 = vld [vmem:[#allocation8 + $0x140] sm:$0xff] }
  0x64   :  { %1254 = vmatpush1.bf16.msra.mxu0 %v1253_v15  ;;  %1288 = vmatprep.subr.bf16.mxu1 %v2116_v16  ;;  %v2142_v59 = vpack.c.bf16 %v303_v56, %v301_v55  ;;  %v302_v61 = vld [vmem:[#allocation8 + $0x150] sm:$0xff]  ;;  %v305_v62 = vld [vmem:[#allocation8 + $0x168] sm:$0xff]  ;;  %v307_v1 = vld [vmem:[#allocation8 + $0x178] sm:$0xff] }
  0x65   :  { %1256 = vmatprep.subr.bf16.mxu0 %v1255_v21  ;;  %v2147_v3 = vpack.c.bf16 %v302_v61, %v300_v60  ;;  %v81_v5 = vld [vmem:[#allocation3 + $0x10] sm:$0xff]  ;;  %v2151_v6 = vpack.c.bf16 %v307_v1, %v305_v62  ;;  %v304_v7 = vld [vmem:[#allocation8 + $0x160] sm:$0xff]  ;;  %v309_v10 = vld [vmem:[#allocation8 + $0x188] sm:$0xff] }
  0x66   :  { %v306_v8 = vld [vmem:[#allocation8 + $0x170] sm:$0xff]  ;;  %v311_v11 = vld [vmem:[#allocation8 + $0x198] sm:$0xff]  ;;  %v308_v18 = vld [vmem:[#allocation8 + $0x180] sm:$0xff] }
  0x67   :  { %1290 = vmatpush1.bf16.msra.mxu1 %v2119_v29  ;;  %v2156_v12 = vpack.c.bf16 %v306_v8, %v304_v7  ;;  %v82_v13 = vld [vmem:[#allocation3 + $0x18] sm:$0xff]  ;;  %v2160_v15 = vpack.c.bf16 %v311_v11, %v309_v10  ;;  %v310_v19 = vld [vmem:[#allocation8 + $0x190] sm:$0xff]  ;;  %v313_v20 = vld [vmem:[#allocation8 + $0x1a8] sm:$0xff] }
  0x68   :  { %1258 = vmatpush1.bf16.msra.mxu0 %v1257_v30  ;;  %1292 = vmatprep.subr.bf16.mxu1 %v2122_v31  ;;  %v315_v21 = vld [vmem:[#allocation8 + $0x1b8] sm:$0xff]  ;;  %v2165_v23 = vpack.c.bf16 %v310_v19, %v308_v18  ;;  %v83_v24 = vld [vmem:[#allocation3 + $0x20] sm:$0xff]  ;;  %v314_v28 = vld [vmem:[#allocation8 + $0x1b0] sm:$0xff] }
  0x69   :  { %1260 = vmatprep.subr.bf16.mxu0 %v1259_v36  ;;  %v2169_v25 = vpack.c.bf16 %v315_v21, %v313_v20  ;;  %v312_v26 = vld [vmem:[#allocation8 + $0x1a0] sm:$0xff]  ;;  %v317_v30 = vld [vmem:[#allocation8 + $0x1c8] sm:$0xff]  ;;  %v319_v32 = vld [vmem:[#allocation8 + $0x1d8] sm:$0xff] }
  0x6a   :  { %v2174_v33 = vpack.c.bf16 %v314_v28, %v312_v26  ;;  %v84_v34 = vld [vmem:[#allocation3 + $0x28] sm:$0xff]  ;;  %v2178_v36 = vpack.c.bf16 %v319_v32, %v317_v30  ;;  %v316_v37 = vld [vmem:[#allocation8 + $0x1c0] sm:$0xff]  ;;  %v318_v38 = vld [vmem:[#allocation8 + $0x1d0] sm:$0xff] }
  0x6b   :  { %1294 = vmatpush1.bf16.msra.mxu1 %v2125_v41  ;;  %v321_v39 = vld [vmem:[#allocation8 + $0x1e8] sm:$0xff]  ;;  %v2183_v44 = vpack.c.bf16 %v318_v38, %v316_v37  ;;  %v85_v45 = vld [vmem:[#allocation3 + $0x30] sm:$0xff]  ;;  %v320_v47 = vld [vmem:[#allocation8 + $0x1e0] sm:$0xff] }
  0x6c   :  { %1262 = vmatpush1.bf16.msra.mxu0 %v1261_v42  ;;  %1296 = vmatprep.subr.bf16.mxu1 %v2128_v43  ;;  %v323_v42 = vld [vmem:[#allocation8 + $0x1f8] sm:$0xff] }
  0x6d   :  { %1328 = vmatprep.subr.bf16.mxu0 %v2081_v4  ;;  %v2187_v46 = vpack.c.bf16 %v323_v42, %v321_v39  ;;  %v86_v54 = vld [vmem:[#allocation3 + $0x38] sm:$0xff] }
  0x6f   :  { %196 = vmatmul.mubr.f32.vlgmr.msra.gmra.mrb[0].mxu0 %v79_v49  ;;  %1298 = vmatpush1.bf16.msra.mxu1 %v2131_v48  ;;  %v322_v49 = vld [vmem:[#allocation8 + $0x1f0] sm:$0xff] }
  0x70   :  { %201 = vmatprep.mubr.f32.mxu0 %v1975_v0  ;;  %1300 = vmatprep.subr.bf16.mxu1 %v2134_v50  ;;  %v2192_v52 = vpack.c.bf16 %v322_v49, %v320_v47 }
  0x71   :  { %1330 = vmatpush1.bf16.msra.mxu0 %v2083_v9 }
  0x72   :  { %1332 = vmatprep.subr.bf16.mxu0 %v2087_v17 }
  0x73   :  { %202 = vmatmul.mubr.f32.gmra.mrb[2].mxu0 %v80_v58  ;;  %1302 = vmatpush1.bf16.msra.mxu1 %v2138_v57  ;;  %v119_v58 = vld [vmem:[%s2519_s2] sm:$0x3] }
  0x74   :  { %207 = vmatprep.mubr.f32.mxu0 %v1975_v0  ;;  %1304 = vmatprep.subr.bf16.mxu1 %v2142_v59 }
  0x75   :  { %1334 = vmatpush1.bf16.msra.mxu0 %v2089_v22 }
  0x76   :  { %1336 = vmatprep.subr.bf16.mxu0 %v2092_v27 }
  0x77   :  { %208 = vmatmul.mubr.f32.gmra.mrb[4].mxu0 %v81_v5  ;;  %1306 = vmatpush1.bf16.msra.mxu1 %v2147_v3 }
  0x78   :  { %213 = vmatprep.mubr.f32.mxu0 %v1975_v0  ;;  %1308 = vmatprep.subr.bf16.mxu1 %v2151_v6 }
  0x79   :  { %1338 = vmatpush1.bf16.msra.mxu0 %v2095_v35 }
  0x7a   :  { %1340 = vmatprep.subr.bf16.mxu0 %v2098_v40 }
  0x7b   :  { %214 = vmatmul.mubr.f32.gmra.mrb[6].mxu0 %v82_v13  ;;  %1310 = vmatpush1.bf16.msra.mxu1 %v2156_v12 }
  0x7c   :  { %219 = vmatprep.mubr.f32.mxu0 %v1975_v0  ;;  %1312 = vmatprep.subr.bf16.mxu1 %v2160_v15 }
  0x7d   :  { %1342 = vmatpush1.bf16.msra.mxu0 %v2101_v51 }
  0x7e   :  { %1344 = vmatprep.subr.bf16.mxu0 %v2104_v53 }
  0x7f   :  { %220 = vmatmul.mubr.f32.gmra.mrb[8].mxu0 %v83_v24  ;;  %1314 = vmatpush1.bf16.msra.mxu1 %v2165_v23 }
  0x80   :  { %225 = vmatprep.mubr.f32.mxu0 %v1975_v0  ;;  %1316 = vmatprep.subr.bf16.mxu1 %v2169_v25 }
  0x81   :  { %1346 = vmatpush1.bf16.msra.mxu0 %v2107_v63 }
  0x82   :  { %1348 = vmatprep.subr.bf16.mxu0 %v2110_v2 }
  0x83   :  { %226 = vmatmul.mubr.f32.gmra.mrb[10].mxu0 %v84_v34  ;;  %1318 = vmatpush1.bf16.msra.mxu1 %v2174_v33 }
  0x84   :  { %231 = vmatprep.mubr.f32.mxu0 %v1975_v0  ;;  %1320 = vmatprep.subr.bf16.mxu1 %v2178_v36 }
  0x85   :  { %1350 = vmatpush1.bf16.msra.mxu0 %v2113_v14 }
  0x86   :  { %1352 = vmatprep.subr.bf16.mxu0 %v2116_v16 }
  0x87   :  { %232 = vmatmul.mubr.f32.gmra.mrb[12].mxu0 %v85_v45  ;;  %1322 = vmatpush1.bf16.msra.mxu1 %v2183_v44 }
  0x88   :  { %237 = vmatprep.mubr.f32.mxu0 %v1975_v0  ;;  %1324 = vmatprep.subr.bf16.mxu1 %v2187_v46 }
  0x89   :  { %1354 = vmatpush1.bf16.msra.mxu0 %v2119_v29 }
  0x8a   :  { %1356 = vmatprep.subr.bf16.mxu0 %v2122_v31 }
  0x8b   :  { %238 = vmatmul.mubr.f32.gmra.mrb[14].mxu0 %v86_v54  ;;  %1326 = vmatpush1.bf16.msra.mxu1 %v2192_v52 }
  0x8c   :  { %1392 = vmatprep.subr.bf16.mxu1 %v2081_v4 }
  0x8d   :  { %1358 = vmatpush1.bf16.msra.mxu0 %v2125_v41 }
  0x8e   :  { %389 = vmatmul.mubr.f32.vlgmr.msra.gmra.mrb[0].mxu1 %v1975_v0  ;;  %1360 = vmatprep.subr.bf16.mxu0 %v2128_v43  ;;  %v121_v0 = vlaneseq }
  0x8f   :  { %1394 = vmatpush1.bf16.msra.mxu1 %v2083_v9 }
  0x90   :  { %1396 = vmatprep.subr.bf16.mxu1 %v2087_v17  ;;  %v122_v55 = vshrl.u32 %v121_v0, 7 }
  0x91   :  { %1362 = vmatpush1.bf16.msra.mxu0 %v2131_v48 }
  0x92   :  { %1364 = vmatprep.subr.bf16.mxu0 %v2134_v50  ;;  %v127_v56 = vsub.s32 1, %v122_v55  ;;  %v123_v61 = vsub.s32 0, %v122_v55 }
  0x93   :  { %1398 = vmatpush1.bf16.msra.mxu1 %v2089_v22 }
  0x94   :  { %1400 = vmatprep.subr.bf16.mxu1 %v2092_v27  ;;  %v128_v60 = vrot.slane %v119_v58, %v127_v56  ;;  %v124_v7 = vrot.slane %v119_v58, %v123_v61 }
  0x95   :  { %1366 = vmatpush1.bf16.msra.mxu0 %v2138_v57 }
  0x96   :  { %1368 = vmatprep.subr.bf16.mxu0 %v2142_v59 }
  0x97   :  { %1402 = vmatpush1.bf16.msra.mxu1 %v2095_v35 }
  0x98   :  { %1404 = vmatprep.subr.bf16.mxu1 %v2098_v40 }
  0x99   :  { %1370 = vmatpush1.bf16.msra.mxu0 %v2147_v3 }
  0x9a   :  { %1372 = vmatprep.subr.bf16.mxu0 %v2151_v6 }
  0x9b   :  { %1406 = vmatpush1.bf16.msra.mxu1 %v2101_v51 }
  0x9c   :  { %1408 = vmatprep.subr.bf16.mxu1 %v2104_v53 }
  0x9d   :  { %1374 = vmatpush1.bf16.msra.mxu0 %v2156_v12 }
  0x9e   :  { %1376 = vmatprep.subr.bf16.mxu0 %v2160_v15 }
  0x9f   :  { %1410 = vmatpush1.bf16.msra.mxu1 %v2107_v63 }
  0xa0   :  { %1412 = vmatprep.subr.bf16.mxu1 %v2110_v2 }
  0xa1   :  { %1378 = vmatpush1.bf16.msra.mxu0 %v2165_v23 }
  0xa2   :  { %1380 = vmatprep.subr.bf16.mxu0 %v2169_v25 }
  0xa3   :  { %1414 = vmatpush1.bf16.msra.mxu1 %v2113_v14 }
  0xa4   :  { %1416 = vmatprep.subr.bf16.mxu1 %v2116_v16 }
  0xa5   :  { %1382 = vmatpush1.bf16.msra.mxu0 %v2174_v33 }
  0xa6   :  { %1384 = vmatprep.subr.bf16.mxu0 %v2178_v36 }
  0xa7   :  { %1418 = vmatpush1.bf16.msra.mxu1 %v2119_v29 }
  0xa8   :  { %1420 = vmatprep.subr.bf16.mxu1 %v2122_v31 }
  0xa9   :  { %1386 = vmatpush1.bf16.msra.mxu0 %v2183_v44 }
  0xaa   :  { %1388 = vmatprep.subr.bf16.mxu0 %v2187_v46 }
  0xab   :  { %1422 = vmatpush1.bf16.msra.mxu1 %v2125_v41 }
  0xac   :  { %1424 = vmatprep.subr.bf16.mxu1 %v2128_v43 }
  0xad   :  { %1390 = vmatpush1.bf16.msra.mxu0 %v2192_v52 }
  0xae   :  { %1456 = vmatprep.subr.bf16.mxu0 %v2081_v4 }
  0xaf   :  { %1426 = vmatpush1.bf16.msra.mxu1 %v2131_v48 }
  0xb0   :  { %1428 = vmatprep.subr.bf16.mxu1 %v2134_v50 }
  0xb3   :  { %1430 = vmatpush1.bf16.msra.mxu1 %v2138_v57 }
  0xb4   :  { %1432 = vmatprep.subr.bf16.mxu1 %v2142_v59 }
  0xb7   :  { %1434 = vmatpush1.bf16.msra.mxu1 %v2147_v3 }
  0xb8   :  { %1436 = vmatprep.subr.bf16.mxu1 %v2151_v6 }
  0xbb   :  { %1438 = vmatpush1.bf16.msra.mxu1 %v2156_v12 }
  0xbc   :  { %1440 = vmatprep.subr.bf16.mxu1 %v2160_v15 }
  0xbf   :  { %1442 = vmatpush1.bf16.msra.mxu1 %v2165_v23 }
  0xc0   :  { %1444 = vmatprep.subr.bf16.mxu1 %v2169_v25 }
  0xc3   :  { %1446 = vmatpush1.bf16.msra.mxu1 %v2174_v33 }
  0xc4   :  { %1448 = vmatprep.subr.bf16.mxu1 %v2178_v36 }
  0xc7   :  { %1450 = vmatpush1.bf16.msra.mxu1 %v2183_v44 }
  0xc8   :  { %1452 = vmatprep.subr.bf16.mxu1 %v2187_v46 }
  0xcb   :  { %1454 = vmatpush1.bf16.msra.mxu1 %v2192_v52 }
  0xcc   :  { %1520 = vmatprep.subr.bf16.mxu1 %v2081_v4 }
 0x142   :  { %v197_v62 = vpop.f32.mrb[0].mxu0 }
 0x143   :  { %v199_v1 = vpop.f32.mrb[1].mxu0 }
 0x144   :  { %v2254_v5 = vadd.f32 %v199_v1, %v128_v60  ;;  %v198_v1 = vadd.f32 %v197_v62, %v124_v7 }
 0x146   :  { %v203_v8 = vpop.f32.mrb[2].mxu0 }
 0x147   :  { %v2256_v10 = vadd.f32 %v203_v8, %v124_v7  ;;  %v205_v11 = vpop.f32.mrb[3].mxu0 }
 0x148   :  { %v2258_v13 = vadd.f32 %v205_v11, %v128_v60 }
 0x14a   :  { %v209_v18 = vpop.f32.mrb[4].mxu0 }
 0x14b   :  { %v2260_v19 = vadd.f32 %v209_v18, %v124_v7  ;;  %v211_v20 = vpop.f32.mrb[5].mxu0 }
 0x14c   :  { %v2262_v21 = vadd.f32 %v211_v20, %v128_v60 }
 0x14e   :  { %v215_v24 = vpop.f32.mrb[6].mxu0 }
 0x14f   :  { %v2264_v26 = vadd.f32 %v215_v24, %v124_v7  ;;  %v217_v28 = vpop.f32.mrb[7].mxu0 }
 0x150   :  { %v2266_v30 = vadd.f32 %v217_v28, %v128_v60 }
 0x152   :  { %v221_v32 = vpop.f32.mrb[8].mxu0 }
 0x153   :  { %v2268_v34 = vadd.f32 %v221_v32, %v124_v7  ;;  %v223_v37 = vpop.f32.mrb[9].mxu0 }
 0x154   :  { %v2270_v38 = vadd.f32 %v223_v37, %v128_v60 }
 0x156   :  { %v227_v39 = vpop.f32.mrb[10].mxu0 }
 0x157   :  { %v2272_v42 = vadd.f32 %v227_v39, %v124_v7  ;;  %v229_v45 = vpop.f32.mrb[11].mxu0 }
 0x158   :  { %v2274_v47 = vadd.f32 %v229_v45, %v128_v60 }
 0x15a   :  { %v233_v49 = vpop.f32.mrb[12].mxu0 }
 0x15b   :  { %v2276_v54 = vadd.f32 %v233_v49, %v124_v7  ;;  %v235_v0 = vpop.f32.mrb[13].mxu0 }
 0x15c   :  { %v236_v55 = vadd.f32 %v235_v0, %v128_v60 }
 0x15e   :  { %v239_v56 = vpop.f32.mrb[14].mxu0 }
 0x15f   :  { %v2278_v58 = vadd.f32 %v239_v56, %v124_v7  ;;  %v241_v61 = vpop.f32.mrb[15].mxu0 }
 0x160   :  { %v242_v8 = vadd.f32 %v241_v61, %v128_v60 }
 0x161   :  { %v390_v11 = vpop.f32.mrb[0].mxu1 }
 0x162   :  { %v399_v18 = vadd.f32 %v390_v11, %v198_v1  ;;  %v392_v20 = vpop.f32.mrb[1].mxu1 }
 0x163   :  { %v405_v24 = vadd.f32 %v392_v20, %v242_v8 }
 0x165   :  { %1817 = vtanh.f32 %v405_v24 }
 0x166   :  { %1819 = vtanh.f32 %v399_v18 }
 0x16f   :  { %v2280_v28 = vpop.eup %1817 }
 0x170   :  { %v2282_v32 = vpop.eup %1819  ;;  %473 = vmatprep.mubr.f32.mxu0 %v2280_v28 }
 0x171   :  { %474 = vmatmul.mubr.f32.vlgmr.msra.gmra.mrb[16].mxu0 %v2282_v32 }
 0x172   :  { %1458 = vmatpush1.bf16.msra.mxu0 %v2083_v9 }
 0x173   :  { %1460 = vmatprep.subr.bf16.mxu0 %v2087_v17 }
 0x176   :  { %1462 = vmatpush1.bf16.msra.mxu0 %v2089_v22 }
 0x177   :  { %1464 = vmatprep.subr.bf16.mxu0 %v2092_v27 }
 0x17a   :  { %1466 = vmatpush1.bf16.msra.mxu0 %v2095_v35 }
 0x17b   :  { %1468 = vmatprep.subr.bf16.mxu0 %v2098_v40 }
 0x17e   :  { %1470 = vmatpush1.bf16.msra.mxu0 %v2101_v51 }
 0x17f   :  { %1472 = vmatprep.subr.bf16.mxu0 %v2104_v53 }
 0x182   :  { %1474 = vmatpush1.bf16.msra.mxu0 %v2107_v63 }
 0x183   :  { %1476 = vmatprep.subr.bf16.mxu0 %v2110_v2 }
 0x186   :  { %1478 = vmatpush1.bf16.msra.mxu0 %v2113_v14 }
 0x187   :  { %1480 = vmatprep.subr.bf16.mxu0 %v2116_v16 }
 0x18a   :  { %1482 = vmatpush1.bf16.msra.mxu0 %v2119_v29 }
 0x18b   :  { %1484 = vmatprep.subr.bf16.mxu0 %v2122_v31 }
 0x18e   :  { %1486 = vmatpush1.bf16.msra.mxu0 %v2125_v41 }
 0x18f   :  { %1488 = vmatprep.subr.bf16.mxu0 %v2128_v43 }
 0x192   :  { %1490 = vmatpush1.bf16.msra.mxu0 %v2131_v48 }
 0x193   :  { %1492 = vmatprep.subr.bf16.mxu0 %v2134_v50 }
 0x196   :  { %1494 = vmatpush1.bf16.msra.mxu0 %v2138_v57 }
 0x197   :  { %1496 = vmatprep.subr.bf16.mxu0 %v2142_v59 }
 0x19a   :  { %1498 = vmatpush1.bf16.msra.mxu0 %v2147_v3 }
 0x19b   :  { %1500 = vmatprep.subr.bf16.mxu0 %v2151_v6 }
 0x19e   :  { %1502 = vmatpush1.bf16.msra.mxu0 %v2156_v12 }
 0x19f   :  { %1504 = vmatprep.subr.bf16.mxu0 %v2160_v15 }
 0x1a2   :  { %1506 = vmatpush1.bf16.msra.mxu0 %v2165_v23 }
 0x1a3   :  { %1508 = vmatprep.subr.bf16.mxu0 %v2169_v25 }
 0x1a6   :  { %1510 = vmatpush1.bf16.msra.mxu0 %v2174_v33 }
 0x1a7   :  { %1512 = vmatprep.subr.bf16.mxu0 %v2178_v36 }
 0x1aa   :  { %1514 = vmatpush1.bf16.msra.mxu0 %v2183_v44 }
 0x1ab   :  { %1516 = vmatprep.subr.bf16.mxu0 %v2187_v46 }
 0x1ae   :  { %1518 = vmatpush1.bf16.msra.mxu0 %v2192_v52 }
 0x1af   :  { %1584 = vmatprep.subr.bf16.mxu0 %v2081_v4 }
 0x244   :  { %v475_v60 = vpop.f32.mrb[16].mxu0 }
 0x245   :  { %v484_v62 = vadd.f32 %v475_v60, %v2256_v10  ;;  %v477_v7 = vpop.f32.mrb[17].mxu0 }
 0x246   :  { %v490_v37 = vadd.f32 %v477_v7, %v236_v55  ;;  %v1020_v7 = vld [vmem:[#allocation9 + $0xc0] sm:$0xff] }
 0x248   :  { %1821 = vtanh.f32 %v490_v37  ;;  %v1021_v37 = vld [vmem:[#allocation9 + $0xc8] sm:$0xff] }
 0x249   :  { %1823 = vtanh.f32 %v484_v62 }
 0x252   :  { %v2319_v39 = vpop.eup %1821 }
 0x253   :  { %v2321_v45 = vpop.eup %1823  ;;  %558 = vmatprep.mubr.f32.mxu1 %v2319_v39 }
 0x254   :  { %559 = vmatmul.mubr.f32.vlgmr.msra.gmra.mrb[2].mxu1 %v2321_v45 }
 0x255   :  { %1522 = vmatpush1.bf16.msra.mxu1 %v2083_v9 }
 0x256   :  { %1524 = vmatprep.subr.bf16.mxu1 %v2087_v17 }
 0x259   :  { %1526 = vmatpush1.bf16.msra.mxu1 %v2089_v22 }
 0x25a   :  { %1528 = vmatprep.subr.bf16.mxu1 %v2092_v27 }
 0x25d   :  { %1530 = vmatpush1.bf16.msra.mxu1 %v2095_v35 }
 0x25e   :  { %1532 = vmatprep.subr.bf16.mxu1 %v2098_v40 }
 0x261   :  { %1534 = vmatpush1.bf16.msra.mxu1 %v2101_v51 }
 0x262   :  { %1536 = vmatprep.subr.bf16.mxu1 %v2104_v53 }
 0x265   :  { %1538 = vmatpush1.bf16.msra.mxu1 %v2107_v63 }
 0x266   :  { %1540 = vmatprep.subr.bf16.mxu1 %v2110_v2 }
 0x269   :  { %1542 = vmatpush1.bf16.msra.mxu1 %v2113_v14 }
 0x26a   :  { %1544 = vmatprep.subr.bf16.mxu1 %v2116_v16 }
 0x26d   :  { %1546 = vmatpush1.bf16.msra.mxu1 %v2119_v29 }
 0x26e   :  { %1548 = vmatprep.subr.bf16.mxu1 %v2122_v31 }
 0x271   :  { %1550 = vmatpush1.bf16.msra.mxu1 %v2125_v41 }
 0x272   :  { %1552 = vmatprep.subr.bf16.mxu1 %v2128_v43 }
 0x275   :  { %1554 = vmatpush1.bf16.msra.mxu1 %v2131_v48 }
 0x276   :  { %1556 = vmatprep.subr.bf16.mxu1 %v2134_v50 }
 0x279   :  { %1558 = vmatpush1.bf16.msra.mxu1 %v2138_v57 }
 0x27a   :  { %1560 = vmatprep.subr.bf16.mxu1 %v2142_v59 }
 0x27d   :  { %1562 = vmatpush1.bf16.msra.mxu1 %v2147_v3 }
 0x27e   :  { %1564 = vmatprep.subr.bf16.mxu1 %v2151_v6 }
 0x281   :  { %1566 = vmatpush1.bf16.msra.mxu1 %v2156_v12 }
 0x282   :  { %1568 = vmatprep.subr.bf16.mxu1 %v2160_v15 }
 0x285   :  { %1570 = vmatpush1.bf16.msra.mxu1 %v2165_v23 }
 0x286   :  { %1572 = vmatprep.subr.bf16.mxu1 %v2169_v25 }
 0x289   :  { %1574 = vmatpush1.bf16.msra.mxu1 %v2174_v33 }
 0x28a   :  { %1576 = vmatprep.subr.bf16.mxu1 %v2178_v36 }
 0x28d   :  { %1578 = vmatpush1.bf16.msra.mxu1 %v2183_v44 }
 0x28e   :  { %1580 = vmatprep.subr.bf16.mxu1 %v2187_v46 }
 0x291   :  { %1582 = vmatpush1.bf16.msra.mxu1 %v2192_v52 }
 0x292   :  { %1648 = vmatprep.subr.bf16.mxu1 %v2081_v4 }
 0x327   :  { %v560_v10 = vpop.f32.mrb[2].mxu1 }
 0x328   :  { %v569_v49 = vadd.f32 %v560_v10, %v2260_v19  ;;  %v562_v0 = vpop.f32.mrb[3].mxu1  ;;  %v1791_v10 = vpack.c.bf16 %v1021_v37, %v1020_v7 }
 0x329   :  { %v575_v55 = vadd.f32 %v562_v0, %v2274_v47  ;;  %v1005_v0 = vld [vmem:[#allocation9 + $0x48] sm:$0xff] }
 0x32b   :  { %1825 = vtanh.f32 %v575_v55 }
 0x32c   :  { %1827 = vtanh.f32 %v569_v49  ;;  %v1004_v49 = vld [vmem:[#allocation9 + $0x40] sm:$0xff] }
 0x32d   :  { %v1793_v55 = vpack.c.bf16 %v1005_v0, %v1004_v49 }
 0x335   :  { %v2359_v56 = vpop.eup %1825 }
 0x336   :  { %v2361_v61 = vpop.eup %1827  ;;  %643 = vmatprep.mubr.f32.mxu0 %v2359_v56 }
 0x337   :  { %644 = vmatmul.mubr.f32.vlgmr.msra.gmra.mrb[18].mxu0 %v2361_v61 }
 0x338   :  { %1586 = vmatpush1.bf16.msra.mxu0 %v2083_v9 }
 0x339   :  { %1588 = vmatprep.subr.bf16.mxu0 %v2087_v17 }
 0x33c   :  { %1590 = vmatpush1.bf16.msra.mxu0 %v2089_v22 }
 0x33d   :  { %1592 = vmatprep.subr.bf16.mxu0 %v2092_v27 }
 0x340   :  { %1594 = vmatpush1.bf16.msra.mxu0 %v2095_v35 }
 0x341   :  { %1596 = vmatprep.subr.bf16.mxu0 %v2098_v40 }
 0x344   :  { %1598 = vmatpush1.bf16.msra.mxu0 %v2101_v51 }
 0x345   :  { %1600 = vmatprep.subr.bf16.mxu0 %v2104_v53 }
 0x348   :  { %1602 = vmatpush1.bf16.msra.mxu0 %v2107_v63 }
 0x349   :  { %1604 = vmatprep.subr.bf16.mxu0 %v2110_v2 }
 0x34c   :  { %1606 = vmatpush1.bf16.msra.mxu0 %v2113_v14 }
 0x34d   :  { %1608 = vmatprep.subr.bf16.mxu0 %v2116_v16 }
 0x350   :  { %1610 = vmatpush1.bf16.msra.mxu0 %v2119_v29 }
 0x351   :  { %1612 = vmatprep.subr.bf16.mxu0 %v2122_v31 }
 0x354   :  { %1614 = vmatpush1.bf16.msra.mxu0 %v2125_v41 }
 0x355   :  { %1616 = vmatprep.subr.bf16.mxu0 %v2128_v43 }
 0x358   :  { %1618 = vmatpush1.bf16.msra.mxu0 %v2131_v48 }
 0x359   :  { %1620 = vmatprep.subr.bf16.mxu0 %v2134_v50 }
 0x35c   :  { %1622 = vmatpush1.bf16.msra.mxu0 %v2138_v57 }
 0x35d   :  { %1624 = vmatprep.subr.bf16.mxu0 %v2142_v59 }
 0x360   :  { %1626 = vmatpush1.bf16.msra.mxu0 %v2147_v3 }
 0x361   :  { %1628 = vmatprep.subr.bf16.mxu0 %v2151_v6 }
 0x364   :  { %1630 = vmatpush1.bf16.msra.mxu0 %v2156_v12 }
 0x365   :  { %1632 = vmatprep.subr.bf16.mxu0 %v2160_v15 }
 0x368   :  { %1634 = vmatpush1.bf16.msra.mxu0 %v2165_v23 }
 0x369   :  { %1636 = vmatprep.subr.bf16.mxu0 %v2169_v25 }
 0x36c   :  { %1638 = vmatpush1.bf16.msra.mxu0 %v2174_v33 }
 0x36d   :  { %1640 = vmatprep.subr.bf16.mxu0 %v2178_v36 }
 0x370   :  { %1642 = vmatpush1.bf16.msra.mxu0 %v2183_v44 }
 0x371   :  { %1644 = vmatprep.subr.bf16.mxu0 %v2187_v46 }
 0x374   :  { %1646 = vmatpush1.bf16.msra.mxu0 %v2192_v52 }
 0x375   :  { %1712 = vmatprep.subr.bf16.mxu0 %v2081_v4 }
 0x40a   :  { %v645_v19 = vpop.f32.mrb[18].mxu0 }
 0x40b   :  { %v654_v47 = vadd.f32 %v645_v19, %v2264_v26  ;;  %v647_v1 = vpop.f32.mrb[19].mxu0  ;;  %v1022_v19 = vld [vmem:[#allocation9 + $0xd0] sm:$0xff] }
 0x40c   :  { %v660_v8 = vadd.f32 %v647_v1, %v2270_v38  ;;  %v1006_v1 = vld [vmem:[#allocation9 + $0x50] sm:$0xff] }
 0x40e   :  { %1829 = vtanh.f32 %v660_v8  ;;  %v1007_v8 = vld [vmem:[#allocation9 + $0x58] sm:$0xff] }
 0x40f   :  { %1831 = vtanh.f32 %v654_v47  ;;  %v1023_v47 = vld [vmem:[#allocation9 + $0xd8] sm:$0xff] }
 0x418   :  { %v2399_v11 = vpop.eup %1829 }
 0x419   :  { %v2401_v18 = vpop.eup %1831  ;;  %728 = vmatprep.mubr.f32.mxu1 %v2399_v11 }
 0x41a   :  { %729 = vmatmul.mubr.f32.vlgmr.msra.gmra.mrb[4].mxu1 %v2401_v18 }
 0x41b   :  { %1650 = vmatpush1.bf16.msra.mxu1 %v2083_v9 }
 0x41c   :  { %1652 = vmatprep.subr.bf16.mxu1 %v2087_v17 }
 0x41f   :  { %1654 = vmatpush1.bf16.msra.mxu1 %v2089_v22 }
 0x420   :  { %1656 = vmatprep.subr.bf16.mxu1 %v2092_v27 }
 0x423   :  { %1658 = vmatpush1.bf16.msra.mxu1 %v2095_v35 }
 0x424   :  { %1660 = vmatprep.subr.bf16.mxu1 %v2098_v40 }
 0x427   :  { %1662 = vmatpush1.bf16.msra.mxu1 %v2101_v51 }
 0x428   :  { %1664 = vmatprep.subr.bf16.mxu1 %v2104_v53 }
 0x42b   :  { %1666 = vmatpush1.bf16.msra.mxu1 %v2107_v63 }
 0x42c   :  { %1668 = vmatprep.subr.bf16.mxu1 %v2110_v2 }
 0x42f   :  { %1670 = vmatpush1.bf16.msra.mxu1 %v2113_v14 }
 0x430   :  { %1672 = vmatprep.subr.bf16.mxu1 %v2116_v16 }
 0x433   :  { %1674 = vmatpush1.bf16.msra.mxu1 %v2119_v29 }
 0x434   :  { %1676 = vmatprep.subr.bf16.mxu1 %v2122_v31 }
 0x437   :  { %1678 = vmatpush1.bf16.msra.mxu1 %v2125_v41 }
 0x438   :  { %1680 = vmatprep.subr.bf16.mxu1 %v2128_v43 }
 0x43b   :  { %1682 = vmatpush1.bf16.msra.mxu1 %v2131_v48 }
 0x43c   :  { %1684 = vmatprep.subr.bf16.mxu1 %v2134_v50 }
 0x43f   :  { %1686 = vmatpush1.bf16.msra.mxu1 %v2138_v57 }
 0x440   :  { %1688 = vmatprep.subr.bf16.mxu1 %v2142_v59 }
 0x443   :  { %1690 = vmatpush1.bf16.msra.mxu1 %v2147_v3 }
 0x444   :  { %1692 = vmatprep.subr.bf16.mxu1 %v2151_v6 }
 0x447   :  { %1694 = vmatpush1.bf16.msra.mxu1 %v2156_v12 }
 0x448   :  { %1696 = vmatprep.subr.bf16.mxu1 %v2160_v15 }
 0x44b   :  { %1698 = vmatpush1.bf16.msra.mxu1 %v2165_v23 }
 0x44c   :  { %1700 = vmatprep.subr.bf16.mxu1 %v2169_v25 }
 0x44f   :  { %1702 = vmatpush1.bf16.msra.mxu1 %v2174_v33 }
 0x450   :  { %1704 = vmatprep.subr.bf16.mxu1 %v2178_v36 }
 0x453   :  { %1706 = vmatpush1.bf16.msra.mxu1 %v2183_v44 }
 0x454   :  { %1708 = vmatprep.subr.bf16.mxu1 %v2187_v46 }
 0x457   :  { %1710 = vmatpush1.bf16.msra.mxu1 %v2192_v52 }
 0x4ed   :  { %v730_v4 = vpop.f32.mrb[4].mxu1 }
 0x4ee   :  { %v736_v26 = vadd.f32 %v730_v4, %v2268_v34  ;;  %v732_v38 = vpop.f32.mrb[5].mxu1  ;;  %v1024_v4 = vld [vmem:[#allocation9 + $0xe0] sm:$0xff] }
 0x4ef   :  { %v739_v20 = vadd.f32 %v732_v38, %v2266_v30  ;;  %v1008_v38 = vld [vmem:[#allocation9 + $0x60] sm:$0xff] }
 0x4f1   :  { %1833 = vtanh.f32 %v739_v20 }
 0x4f2   :  { %1835 = vtanh.f32 %v736_v26  ;;  %v1025_v26 = vld [vmem:[#allocation9 + $0xe8] sm:$0xff] }
 0x4f3   :  { %v1799_v20 = vpack.c.bf16 %v1025_v26, %v1024_v4 }
 0x4fb   :  { %v2438_v24 = vpop.eup %1833 }
 0x4fc   :  { %v2440_v60 = vpop.eup %1835  ;;  %807 = vmatprep.mubr.f32.mxu0 %v2438_v24 }
 0x4fd   :  { %808 = vmatmul.mubr.f32.vlgmr.msra.gmra.mrb[20].mxu0 %v2440_v60 }
 0x4fe   :  { %1714 = vmatpush1.bf16.msra.mxu0 %v2083_v9 }
 0x4ff   :  { %1716 = vmatprep.subr.bf16.mxu0 %v2087_v17 }
 0x502   :  { %1718 = vmatpush1.bf16.msra.mxu0 %v2089_v22 }
 0x503   :  { %1720 = vmatprep.subr.bf16.mxu0 %v2092_v27 }
 0x506   :  { %1722 = vmatpush1.bf16.msra.mxu0 %v2095_v35 }
 0x507   :  { %1724 = vmatprep.subr.bf16.mxu0 %v2098_v40 }
 0x50a   :  { %1726 = vmatpush1.bf16.msra.mxu0 %v2101_v51  ;;  %v1012_v51 = vld [vmem:[#allocation9 + $0x80] sm:$0xff] }
 0x50b   :  { %1728 = vmatprep.subr.bf16.mxu0 %v2104_v53  ;;  %v1013_v53 = vld [vmem:[#allocation9 + $0x88] sm:$0xff] }
 0x50e   :  { %1730 = vmatpush1.bf16.msra.mxu0 %v2107_v63  ;;  %v996_v63 = vld [vmem:[#allocation9] sm:$0xff] }
 0x50f   :  { %1732 = vmatprep.subr.bf16.mxu0 %v2110_v2  ;;  %v1775_v2 = vpack.c.bf16 %v1013_v53, %v1012_v51  ;;  %v1010_v53 = vld [vmem:[#allocation9 + $0x70] sm:$0xff] }
 0x511   :  { %1776 = vmatprep.subr.bf16.mxu1 %v1775_v2 }
 0x512   :  { %1734 = vmatpush1.bf16.msra.mxu0 %v2113_v14  ;;  %v997_v14 = vld [vmem:[#allocation9 + $0x8] sm:$0xff] }
 0x513   :  { %1736 = vmatprep.subr.bf16.mxu0 %v2116_v16  ;;  %v1014_v16 = vld [vmem:[#allocation9 + $0x90] sm:$0xff] }
 0x516   :  { %1738 = vmatpush1.bf16.msra.mxu0 %v2119_v29  ;;  %v1015_v29 = vld [vmem:[#allocation9 + $0x98] sm:$0xff] }
 0x517   :  { %1740 = vmatprep.subr.bf16.mxu0 %v2122_v31  ;;  %v1777_v31 = vpack.c.bf16 %v997_v14, %v996_v63  ;;  %v1011_v63 = vld [vmem:[#allocation9 + $0x78] sm:$0xff] }
 0x518   :  { %v1805_v2 = vpack.c.bf16 %v1011_v63, %v1010_v53 }
 0x51a   :  { %1742 = vmatpush1.bf16.msra.mxu0 %v2125_v41  ;;  %v1779_v41 = vpack.c.bf16 %v1015_v29, %v1014_v16 }
 0x51b   :  { %1744 = vmatprep.subr.bf16.mxu0 %v2128_v43  ;;  %v998_v43 = vld [vmem:[#allocation9 + $0x10] sm:$0xff] }
 0x51e   :  { %1746 = vmatpush1.bf16.msra.mxu0 %v2131_v48  ;;  %v999_v48 = vld [vmem:[#allocation9 + $0x18] sm:$0xff] }
 0x51f   :  { %1748 = vmatprep.subr.bf16.mxu0 %v2134_v50  ;;  %v1016_v50 = vld [vmem:[#allocation9 + $0xa0] sm:$0xff] }
 0x522   :  { %1750 = vmatpush1.bf16.msra.mxu0 %v2138_v57  ;;  %v1017_v57 = vld [vmem:[#allocation9 + $0xa8] sm:$0xff] }
 0x523   :  { %1752 = vmatprep.subr.bf16.mxu0 %v2142_v59  ;;  %v1781_v59 = vpack.c.bf16 %v999_v48, %v998_v43 }
 0x526   :  { %1754 = vmatpush1.bf16.msra.mxu0 %v2147_v3  ;;  %v1783_v3 = vpack.c.bf16 %v1017_v57, %v1016_v50 }
 0x527   :  { %1756 = vmatprep.subr.bf16.mxu0 %v2151_v6  ;;  %v1000_v6 = vld [vmem:[#allocation9 + $0x20] sm:$0xff] }
 0x52a   :  { %1758 = vmatpush1.bf16.msra.mxu0 %v2156_v12  ;;  %v1001_v12 = vld [vmem:[#allocation9 + $0x28] sm:$0xff] }
 0x52b   :  { %1760 = vmatprep.subr.bf16.mxu0 %v2160_v15  ;;  %v1018_v15 = vld [vmem:[#allocation9 + $0xb0] sm:$0xff] }
 0x52e   :  { %1762 = vmatpush1.bf16.msra.mxu0 %v2165_v23  ;;  %v1019_v23 = vld [vmem:[#allocation9 + $0xb8] sm:$0xff] }
 0x52f   :  { %1764 = vmatprep.subr.bf16.mxu0 %v2169_v25  ;;  %v1785_v25 = vpack.c.bf16 %v1001_v12, %v1000_v6 }
 0x532   :  { %1766 = vmatpush1.bf16.msra.mxu0 %v2174_v33  ;;  %v1787_v33 = vpack.c.bf16 %v1019_v23, %v1018_v15 }
 0x533   :  { %1768 = vmatprep.subr.bf16.mxu0 %v2178_v36  ;;  %v1002_v36 = vld [vmem:[#allocation9 + $0x30] sm:$0xff] }
 0x536   :  { %1770 = vmatpush1.bf16.msra.mxu0 %v2183_v44  ;;  %v1003_v44 = vld [vmem:[#allocation9 + $0x38] sm:$0xff] }
 0x537   :  { %1772 = vmatprep.subr.bf16.mxu0 %v2187_v46  ;;  %v1789_v46 = vpack.c.bf16 %v1003_v44, %v1002_v36 }
 0x53a   :  { %1774 = vmatpush1.bf16.msra.mxu0 %v2192_v52 }
 0x5d0   :  { %v809_v9 = vpop.f32.mrb[20].mxu0 }
 0x5d1   :  { %v815_v17 = vadd.f32 %v809_v9, %v2272_v42  ;;  %v811_v22 = vpop.f32.mrb[21].mxu0  ;;  %v1009_v9 = vld [vmem:[#allocation9 + $0x68] sm:$0xff] }
 0x5d2   :  { %v818_v27 = vadd.f32 %v811_v22, %v2262_v21  ;;  %v1027_v22 = vld [vmem:[#allocation9 + $0xf8] sm:$0xff] }
 0x5d4   :  { %1837 = vtanh.f32 %v818_v27  ;;  %v1801_v27 = vpack.c.bf16 %v1009_v9, %v1008_v38 }
 0x5d5   :  { %1839 = vtanh.f32 %v815_v17  ;;  %v1026_v17 = vld [vmem:[#allocation9 + $0xf0] sm:$0xff] }
 0x5d6   :  { %v1803_v51 = vpack.c.bf16 %v1027_v22, %v1026_v17 }
 0x5de   :  { %v2477_v35 = vpop.eup %1837 }
 0x5df   :  { %v2479_v40 = vpop.eup %1839  ;;  %886 = vmatprep.mubr.f32.mxu1 %v2477_v35 }
 0x5e0   :  { %887 = vmatmul.mubr.f32.vlgmr.msra.gmra.mrb[6].mxu1 %v2479_v40 }
 0x5e1   :  { %1778 = vmatpush3.bf16.msra.mxu1 %v1777_v31 }
 0x5e2   :  { %1780 = vmatprep.subr.bf16.mxu1 %v1779_v41 }
 0x5e5   :  { %1782 = vmatpush3.bf16.msra.mxu1 %v1781_v59 }
 0x5e6   :  { %1784 = vmatprep.subr.bf16.mxu1 %v1783_v3 }
 0x5e9   :  { %1786 = vmatpush3.bf16.msra.mxu1 %v1785_v25 }
 0x5ea   :  { %1788 = vmatprep.subr.bf16.mxu1 %v1787_v33 }
 0x5ed   :  { %1790 = vmatpush3.bf16.msra.mxu1 %v1789_v46 }
 0x5ee   :  { %1792 = vmatprep.subr.bf16.mxu1 %v1791_v10 }
 0x5f1   :  { %1794 = vmatpush3.bf16.msra.mxu1 %v1793_v55 }
 0x6b3   :  { %v888_v52 = vpop.f32.mrb[6].mxu1 }
 0x6b4   :  { %v894_v21 = vadd.f32 %v888_v52, %v2276_v54  ;;  %v890_v30 = vpop.f32.mrb[7].mxu1  ;;  %v1795_v54 = vpack.c.bf16 %v1023_v47, %v1022_v19 }
 0x6b5   :  { %v897_v34 = vadd.f32 %v890_v30, %v2258_v13  ;;  %v1797_v13 = vpack.c.bf16 %v1007_v8, %v1006_v1 }
 0x6b6   :  { %1796 = vmatprep.subr.bf16.mxu1 %v1795_v54 }
 0x6b7   :  { %1841 = vtanh.f32 %v897_v34  ;;  %1798 = vmatpush3.bf16.msra.mxu1 %v1797_v13 }
 0x6b8   :  { %1843 = vtanh.f32 %v894_v21  ;;  %1800 = vmatprep.subr.bf16.mxu1 %v1799_v20 }
 0x6bb   :  { %1802 = vmatpush3.bf16.msra.mxu1 %v1801_v27 }
 0x6bc   :  { %1804 = vmatprep.subr.bf16.mxu1 %v1803_v51 }
 0x6bf   :  { %1806 = vmatpush3.bf16.msra.mxu1 %v1805_v2 }
 0x6c1   :  { %v1842_v42 = vpop.eup %1841 }
 0x6c2   :  { %v1844_v62 = vpop.eup %1843  ;;  %965 = vmatprep.mubr.f32.mxu0 %v1842_v42 }
 0x6c3   :  { %966 = vmatmul.mubr.f32.vlgmr.msra.gmra.mrb[22].mxu0 %v1844_v62 }
 0x796   :  { %v967_v14 = vpop.f32.mrb[22].mxu0 }
 0x797   :  { %v973_v16 = vadd.f32 %v967_v14, %v2278_v58  ;;  %v969_v29 = vpop.f32.mrb[23].mxu0 }
 0x798   :  { %v976_v31 = vadd.f32 %v969_v29, %v2254_v5 }
 0x79a   :  { %1845 = vtanh.f32 %v976_v31 }
 0x79b   :  { %1847 = vtanh.f32 %v973_v16 }
 0x7a4   :  { %v1846_v41 = vpop.eup %1845 }
 0x7a5   :  { %1099 = vmatprep.mubr.f32.mxu1 %v1846_v41  ;;  %v1848_v5 = vpop.eup %1847 }
 0x7a6   :  { %1100 = vmatmul.mubr.f32.vlgmr.msra.gmra.mrb[8].mxu1 %v2282_v32  ;;  %v1174_v32 = vld [vmem:[%s2522_s5] ss:$0 sm:$0xff]  ;;  %s1976_s5 = smov [#allocation11]  }
 0x7a7   :  { %1104 = vmatprep.mubr.f32.mxu1 %v1842_v42  ;;  %s1153_s25 = sshll.u32 %s1976_s5, 4  ;;  %s1154_s25 = int_to_ptr.vmem [resolvable:$true] %s1153_s25 }
 0x7a8   :  { %s1937_s26 = scalar_lea.vmem %s1154_s25, 1024  ;;  %p1942_p5 = scmp.lt.s32.totalorder %s1154_s25, %s1154_s25 }
 0x7a9   :  { %p1938_p4 = scmp.ne.s32.totalorder %s1154_s25, %s1937_s26  ;;  %p1943_p6 = scmp.lt.s32.totalorder %s1937_s26, %s1937_s26 }
 0x7aa   :  { %1105 = vmatmul.mubr.f32.gmra.mrb[10].mxu1 %v2321_v45 }
 0x7ab   :  { %1109 = vmatprep.mubr.f32.mxu1 %v2477_v35  ;;  %p1944_p7 = por %p1943_p6, %p1942_p5 }
 0x7ad   :  { %p1945_p8 = pnand %p1944_p7, %p1938_p4 }
 0x7ae   :  { %1110 = vmatmul.mubr.f32.gmra.mrb[12].mxu1 %v2361_v61 }
 0x7af   :  { %1114 = vmatprep.mubr.f32.mxu1 %v2438_v24 }
 0x7b2   :  { %1115 = vmatmul.mubr.f32.gmra.mrb[14].mxu1 %v2401_v18 }
 0x7b3   :  { %1119 = vmatprep.mubr.f32.mxu1 %v2399_v11 }
 0x7b6   :  { %1120 = vmatmul.mubr.f32.gmra.mrb[16].mxu1 %v2440_v60 }
 0x7b7   :  { %1124 = vmatprep.mubr.f32.mxu1 %v2359_v56 }
 0x7ba   :  { %1125 = vmatmul.mubr.f32.gmra.mrb[18].mxu1 %v2479_v40 }
 0x7bb   :  { %1129 = vmatprep.mubr.f32.mxu1 %v2319_v39 }
 0x7be   :  { %1130 = vmatmul.mubr.f32.gmra.mrb[20].mxu1 %v1844_v62 }
 0x7bf   :  { %1134 = vmatprep.mubr.f32.mxu1 %v2280_v28 }
 0x7c2   :  { %1135 = vmatmul.mubr.f32.gmra.mrb[22].mxu1 %v1848_v5 }
 0x879   :  { %v1207_v58 = vpop.f32.mrb[8].mxu1 }
 0x87a   :  { %v1208_v45 = vpop.f32.mrb[9].mxu1 }
 0x87b   :  { %v1209_v61 = vadd.f32 %v1208_v45, %v1207_v58 }
 0x87d   :  { %v1102_v11 = vadd.f32 %v1209_v61, %v1174_v32  ;;  %v1210_v18 = vpop.f32.mrb[10].mxu1 }
 0x87e   :  { %v1211_v24 = vpop.f32.mrb[11].mxu1 }
 0x87f   :  { %1140 = vst [vmem:[#allocation11] sm:$0xff] %v1102_v11  ;;  %v1212_v56 = vadd.f32 %v1211_v24, %v1210_v18 }
 0x881   :  { %v1107_v60 = vadd.f32 %v1212_v56, %v1174_v32  ;;  %v1213_v35 = vpop.f32.mrb[12].mxu1 }
 0x882   :  { %v1214_v39 = vpop.f32.mrb[13].mxu1 }
 0x883   :  { %1141 = vst [vmem:[#allocation11 + $0x8] sm:$0xff] %v1107_v60  ;;  %v1215_v40 = vadd.f32 %v1214_v39, %v1213_v35 }
 0x885   :  { %v1112_v28 = vadd.f32 %v1215_v40, %v1174_v32  ;;  %v1216_v43 = vpop.f32.mrb[14].mxu1 }
 0x886   :  { %v1217_v48 = vpop.f32.mrb[15].mxu1 }
 0x887   :  { %1142 = vst [vmem:[#allocation11 + $0x10] sm:$0xff] %v1112_v28  ;;  %v1218_v50 = vadd.f32 %v1217_v48, %v1216_v43 }
 0x889   :  { %v1117_v57 = vadd.f32 %v1218_v50, %v1174_v32  ;;  %v1219_v59 = vpop.f32.mrb[16].mxu1 }
 0x88a   :  { %v1220_v3 = vpop.f32.mrb[17].mxu1 }
 0x88b   :  { %1143 = vst [vmem:[#allocation11 + $0x18] sm:$0xff] %v1117_v57  ;;  %v1221_v6 = vadd.f32 %v1220_v3, %v1219_v59 }
 0x88d   :  { %v1122_v12 = vadd.f32 %v1221_v6, %v1174_v32  ;;  %v1222_v15 = vpop.f32.mrb[18].mxu1 }
 0x88e   :  { %v1223_v23 = vpop.f32.mrb[19].mxu1 }
 0x88f   :  { %1144 = vst [vmem:[#allocation11 + $0x20] sm:$0xff] %v1122_v12  ;;  %v1224_v25 = vadd.f32 %v1223_v23, %v1222_v15 }
 0x891   :  { %v1127_v33 = vadd.f32 %v1224_v25, %v1174_v32  ;;  %v1225_v36 = vpop.f32.mrb[20].mxu1 }
 0x892   :  { %v1226_v44 = vpop.f32.mrb[21].mxu1 }
 0x893   :  { %1145 = vst [vmem:[#allocation11 + $0x28] sm:$0xff] %v1127_v33  ;;  %v1227_v46 = vadd.f32 %v1226_v44, %v1225_v36 }
 0x895   :  { %v1132_v52 = vadd.f32 %v1227_v46, %v1174_v32  ;;  %v1228_v21 = vpop.f32.mrb[22].mxu1 }
 0x896   :  { %v1229_v30 = vpop.f32.mrb[23].mxu1 }
 0x897   :  { %1146 = vst [vmem:[#allocation11 + $0x30] sm:$0xff] %v1132_v52  ;;  %v1230_v34 = vadd.f32 %v1229_v30, %v1228_v21 }
 0x899   :  { %v1137_v42 = vadd.f32 %v1230_v34, %v1174_v32 }
 0x89b   :  { %1147 = vst [vmem:[#allocation11 + $0x38] sm:$0xff] %v1137_v42 }
 0x89c   :  { %1948 = shalt.err (!%p1945_p8)
}
 0x89d   :  { %s1949_s29 = scalar_lea.hbm %s2523_s6, 1024 }
 0x89e   :  { %p1950_p9 = scmp.ne.s32.totalorder %s2523_s6, %s1949_s29  ;;  %p1953_p10 = scmp.lt.u32.totalorder %s1949_s29, %s2523_s6 }
 0x8a0   :  { %p1955_p11 = pnand %p1953_p10, %p1950_p9 }
 0x8a2   :  { %1958 = shalt.err (!%p1955_p11)
}
 0x8a3   :  { %1159 = dma.vmem_to_hbm [thread:$0]  %s1154_s25, 1024, %s2523_s6, [#allocation5], %s1971_s1, %s1971_s1, %s1972_s21  }
 0x8a4   :  { %1965 = dma.done.wait [#allocation5], 1024  }
 0x8a5   :  { %1966 = vsyncadd [#allocation5], 4294966272 }
 0x8a6   :  { %1163 = vsyncpa [#allocation4], 1 }
 0x8a7   :  { %1164 = vsyncpa [#allocation7], 1 }
 0x8a8   :  { %1165 = vsyncpa [#allocation10], 1 }
 0x8a9   :  { %1166 = vsyncpa [#allocation5], 1 }

</bundles_post_ra>
